<compile_context>
chip_gen: v6e
topology: v6e:2x2x1
jax: 0.10.0
libtpu: 0.0.40
codegen_flags: <defaults>
</compile_context>

<pallas_src>
import jax
import jax.numpy as jnp
from jax.experimental import pallas as pl
from jax.experimental.pallas import tpu as pltpu

# ----------------------------- synthetic config -----------------------------
VOCAB = 64
MAX_POS = 16
TYPE_VOCAB = 2
HIDDEN = 32
N_HEADS = 4
HEAD_DIM = HIDDEN // N_HEADS
INTERMEDIATE = 64
N_LAYERS = 2
LN_EPS = 1e-12


# --------------------------- in-kernel helper math ---------------------------
def _layernorm(x, gamma, beta):
    mean = jnp.mean(x, axis=-1, keepdims=True)
    c = x - mean
    var = jnp.mean(c * c, axis=-1, keepdims=True)
    return c * jax.lax.rsqrt(var + jnp.float32(LN_EPS)) * gamma + beta


def _gelu_tanh(x):
    # TODO(synk): HF "gelu" for BERT is erf-based; tanh approximation used here.
    c = jnp.float32(0.7978845608028654)  # sqrt(2/pi)
    return 0.5 * x * (1.0 + jnp.tanh(c * (x + 0.044715 * x * x * x)))


# ------------------------------- fused kernel --------------------------------
def _encoder_kernel(
    emb_ref, kmask_ref, emb_g_ref, emb_b_ref,
    wqkv_ref, bqkv_ref, wo_ref, bo_ref, ln1_g_ref, ln1_b_ref,
    wi_ref, bi_ref, wo2_ref, bo2_ref, ln2_g_ref, ln2_b_ref,
    pool_w_ref, pool_b_ref,
    seq_ref, pool_ref,
    x_ref,                                   # VMEM scratch: carried activation
):
    layer = pl.program_id(1)
    n_layers = pl.num_programs(1)

    # First layer of this batch row: embedding LayerNorm straight into the
    # carried VMEM activation (no zero-residual stream, no HBM round trip).
    @pl.when(layer == 0)
    def _():
        x_ref[...] = _layernorm(emb_ref[...].astype(jnp.float32),
                                emb_g_ref[...], emb_b_ref[...])

    x = x_ref[...]                            # [S, H] f32, VMEM-resident
    kmask = kmask_ref[...]                    # [1, S] additive key mask

    # ---- self-attention (fused QKV; 1/sqrt(dh) already folded into wq/bq)
    qkv = (jnp.dot(x, wqkv_ref[...], preferred_element_type=jnp.float32)
           + bqkv_ref[...])                   # [S, 3H]
    wo = wo_ref[...]
    attn = jnp.zeros_like(x)
    for h in range(N_HEADS):                  # static unroll, nH = 4
        lo = h * HEAD_DIM
        q_h = qkv[:, lo:lo + HEAD_DIM]
        k_h = qkv[:, HIDDEN + lo:HIDDEN + lo + HEAD_DIM]
        v_h = qkv[:, 2 * HIDDEN + lo:2 * HIDDEN + lo + HEAD_DIM]
        s = jnp.einsum("qd,kd->qk", q_h, k_h,
                       preferred_element_type=jnp.float32) + kmask
        s = s - jnp.max(s, axis=-1, keepdims=True)
        p = jnp.exp(s)
        p = p * pl.reciprocal(jnp.sum(p, axis=-1, keepdims=True), approx=True)
        ctx_h = jnp.dot(p, v_h, preferred_element_type=jnp.float32)   # [S, dh]
        # (concat_h ctx_h) @ wo  ==  sum_h ctx_h @ wo[h*dh:(h+1)*dh, :]
        attn = attn + jnp.dot(ctx_h, wo[lo:lo + HEAD_DIM, :],
                              preferred_element_type=jnp.float32)
    attn = attn + bo_ref[...]
    x = _layernorm(attn + x, ln1_g_ref[...], ln1_b_ref[...])

    # ---- feed-forward
    inter = _gelu_tanh(jnp.dot(x, wi_ref[...],
                               preferred_element_type=jnp.float32) + bi_ref[...])
    ffn = jnp.dot(inter, wo2_ref[...],
                  preferred_element_type=jnp.float32) + bo2_ref[...]
    x = _layernorm(ffn + x, ln2_g_ref[...], ln2_b_ref[...])

    x_ref[...] = x                            # carry to next layer

    # ---- finalize: sequence output + fused tanh pooler on the CLS row
    @pl.when(layer == n_layers - 1)
    def _():
        seq_ref[...] = x.astype(seq_ref.dtype)
        cls = x[0:1, :]                       # [1, H]
        pooled = jnp.tanh(jnp.dot(cls, pool_w_ref[...],
                                  preferred_element_type=jnp.float32)
                          + pool_b_ref[...])
        pool_ref[...] = pooled.astype(pool_ref.dtype)


def bert_encoder(emb, key_add, sp):
    """One fused pallas_call for embedding-LN + all layers + pooler."""
    B, S, H = emb.shape
    L = sp["wqkv"].shape[0]
    I = sp["wi"].shape[-1]

    def batch_spec(*minor):
        return pl.BlockSpec((None,) + minor, lambda b, l: (b,) + (0,) * len(minor))

    def layer_spec(*minor):
        return pl.BlockSpec((None,) + minor, lambda b, l: (l,) + (0,) * len(minor))

    def const_spec(shape):
        nd = len(shape)
        return pl.BlockSpec(shape, lambda b, l: (0,) * nd)

    in_specs = [
        batch_spec(S, H),          # emb
        batch_spec(1, S),          # additive key mask
        const_spec((1, H)),        # emb_ln_g
        const_spec((1, H)),        # emb_ln_b
        layer_spec(H, 3 * H),      # wqkv
        layer_spec(1, 3 * H),      # bqkv
        layer_spec(H, H),          # wo
        layer_spec(1, H),          # bo
        layer_spec(1, H),          # ln1_g
        layer_spec(1, H),          # ln1_b
        layer_spec(H, I),          # wi
        layer_spec(1, I),          # bi
        layer_spec(I, H),          # wo2
        layer_spec(1, H),          # bo2
        layer_spec(1, H),          # ln2_g
        layer_spec(1, H),          # ln2_b
        const_spec((H, H)),        # pool_w
        const_spec((1, H)),        # pool_b
    ]
    out_specs = (
        batch_spec(S, H),          # sequence output
        batch_spec(1, H),          # pooled output
    )
    out_shape = (
        jax.ShapeDtypeStruct((B, S, H), jnp.float32),
        jax.ShapeDtypeStruct((B, 1, H), jnp.float32),
    )
    return pl.pallas_call(
        _encoder_kernel,
        out_shape=out_shape,
        grid=(B, L),
        in_specs=in_specs,
        out_specs=out_specs,
        scratch_shapes=[pltpu.VMEM((S, H), jnp.float32)],
        compiler_params=pltpu.CompilerParams(
            dimension_semantics=("parallel", "arbitrary")),
    )(emb, key_add,
      sp["emb_ln_g"], sp["emb_ln_b"],
      sp["wqkv"], sp["bqkv"],
      sp["wo"], sp["bo"], sp["ln1_g"], sp["ln1_b"],
      sp["wi"], sp["bi"], sp["wo2"], sp["bo2"], sp["ln2_g"], sp["ln2_b"],
      sp["pool_w"], sp["pool_b"])


# ------------------------------- parameters ---------------------------------
def init_params(key):
    def nrm(k, shape, scale=0.02):
        return scale * jax.random.normal(k, shape, dtype=jnp.float32)

    keys = iter(jax.random.split(key, 8 + N_LAYERS * 8))
    p = {
        "word_emb": nrm(next(keys), (VOCAB, HIDDEN)),
        "pos_emb": nrm(next(keys), (MAX_POS, HIDDEN)),
        "type_emb": nrm(next(keys), (TYPE_VOCAB, HIDDEN)),
        "emb_ln_g": jnp.ones((HIDDEN,), jnp.float32),
        "emb_ln_b": jnp.zeros((HIDDEN,), jnp.float32),
        "pool_w": nrm(next(keys), (HIDDEN, HIDDEN)),
        "pool_b": jnp.zeros((HIDDEN,), jnp.float32),
        "layers": [],
    }
    for _ in range(N_LAYERS):
        p["layers"].append({
            "wq": nrm(next(keys), (HIDDEN, HIDDEN)),
            "bq": jnp.zeros((HIDDEN,), jnp.float32),
            "wk": nrm(next(keys), (HIDDEN, HIDDEN)),
            "bk": jnp.zeros((HIDDEN,), jnp.float32),
            "wv": nrm(next(keys), (HIDDEN, HIDDEN)),
            "bv": jnp.zeros((HIDDEN,), jnp.float32),
            "wo": nrm(next(keys), (HIDDEN, HIDDEN)),
            "bo": jnp.zeros((HIDDEN,), jnp.float32),
            "ln1_g": jnp.ones((HIDDEN,), jnp.float32),
            "ln1_b": jnp.zeros((HIDDEN,), jnp.float32),
            "wi": nrm(next(keys), (HIDDEN, INTERMEDIATE)),
            "bi": jnp.zeros((INTERMEDIATE,), jnp.float32),
            "wo2": nrm(next(keys), (INTERMEDIATE, HIDDEN)),
            "bo2": jnp.zeros((HIDDEN,), jnp.float32),
            "ln2_g": jnp.ones((HIDDEN,), jnp.float32),
            "ln2_b": jnp.zeros((HIDDEN,), jnp.float32),
        })
    return p


def stack_params(params):
    """One-time staging: fuse wq|wk|wv, fold the 1/sqrt(dh) scale into Q,
    stack per-layer weights on a leading layer axis for the kernel grid."""
    scale = jnp.float32(1.0 / (HEAD_DIM ** 0.5))
    ls = params["layers"]

    def stk(fn):
        return jnp.stack([fn(l) for l in ls], axis=0)

    return {
        "word_emb": params["word_emb"],
        "pos_emb": params["pos_emb"],
        "type_emb": params["type_emb"],
        "emb_ln_g": params["emb_ln_g"].reshape(1, HIDDEN),
        "emb_ln_b": params["emb_ln_b"].reshape(1, HIDDEN),
        "wqkv": stk(lambda l: jnp.concatenate(
            [l["wq"] * scale, l["wk"], l["wv"]], axis=1)),            # [L, H, 3H]
        "bqkv": stk(lambda l: jnp.concatenate(
            [l["bq"] * scale, l["bk"], l["bv"]]).reshape(1, 3 * HIDDEN)),
        "wo": stk(lambda l: l["wo"]),
        "bo": stk(lambda l: l["bo"].reshape(1, HIDDEN)),
        "ln1_g": stk(lambda l: l["ln1_g"].reshape(1, HIDDEN)),
        "ln1_b": stk(lambda l: l["ln1_b"].reshape(1, HIDDEN)),
        "wi": stk(lambda l: l["wi"]),
        "bi": stk(lambda l: l["bi"].reshape(1, INTERMEDIATE)),
        "wo2": stk(lambda l: l["wo2"]),
        "bo2": stk(lambda l: l["bo2"].reshape(1, HIDDEN)),
        "ln2_g": stk(lambda l: l["ln2_g"].reshape(1, HIDDEN)),
        "ln2_b": stk(lambda l: l["ln2_b"].reshape(1, HIDDEN)),
        "pool_w": params["pool_w"],
        "pool_b": params["pool_b"].reshape(1, HIDDEN),
    }


# ------------------------------- forward pass --------------------------------
def bertology_forward(sp, input_ids, attention_mask=None,
                      token_type_ids=None, position_ids=None):
    B, S = input_ids.shape
    if attention_mask is None:
        attention_mask = jnp.ones((B, S), jnp.int32)
    if token_type_ids is None:
        token_type_ids = jnp.zeros((B, S), jnp.int32)
    if position_ids is None:
        position_ids = jnp.broadcast_to(jnp.arange(S, dtype=jnp.int32), (B, S))

    # Embedding gathers are glue (plain JAX); everything else is one fused
    # Pallas kernel.
    emb = (sp["word_emb"][input_ids]
           + sp["pos_emb"][position_ids]
           + sp["type_emb"][token_type_ids])                      # [B, S, H]

    # HF extended attention mask (additive): (1 - mask) * -10000, [B, 1, S]
    key_add = ((1.0 - attention_mask.astype(jnp.float32)) * -10000.0)[:, None, :]

    sequence_output, pooled = bert_encoder(emb, key_add, sp)
    # Mirrors HF BaseModelOutputWithPooling as a tuple.
    return sequence_output, pooled[:, 0, :]


# ----------------------------------- main ------------------------------------
if __name__ == "__main__":
    key = jax.random.PRNGKey(0)
    pkey, ikey = jax.random.split(key)
    params = init_params(pkey)
    sp = stack_params(params)   # one-time weight staging (QKV fuse, scale fold)

    B, S = 2, 8
    input_ids = jax.random.randint(ikey, (B, S), 0, VOCAB, dtype=jnp.int32)
    attention_mask = jnp.ones((B, S), jnp.int32).at[1, 6:].set(0)  # ragged mask
    token_type_ids = jnp.zeros((B, S), jnp.int32)

    fwd = jax.jit(bertology_forward)
    seq_out, pooled = fwd(sp, input_ids, attention_mask, token_type_ids)
    jax.block_until_ready(seq_out)
    jax.block_until_ready(pooled)
    assert seq_out.shape == (B, S, HIDDEN)
    assert pooled.shape == (B, HIDDEN)
    print("KERNEL_OK")
</pallas_src>

<mosaic_0001>
module attributes {stable_mosaic.version = 11 : i64} {
  func.func @_encoder_kernel(%arg0: i32, %arg1: i32, %arg2: memref<1x8x32xf32, #tpu.memory_space<vmem>>, %arg3: memref<1x1x8xf32, #tpu.memory_space<vmem>>, %arg4: memref<1x32xf32, #tpu.memory_space<vmem>>, %arg5: memref<1x32xf32, #tpu.memory_space<vmem>>, %arg6: memref<1x32x96xf32, #tpu.memory_space<vmem>>, %arg7: memref<1x1x96xf32, #tpu.memory_space<vmem>>, %arg8: memref<1x32x32xf32, #tpu.memory_space<vmem>>, %arg9: memref<1x1x32xf32, #tpu.memory_space<vmem>>, %arg10: memref<1x1x32xf32, #tpu.memory_space<vmem>>, %arg11: memref<1x1x32xf32, #tpu.memory_space<vmem>>, %arg12: memref<1x32x64xf32, #tpu.memory_space<vmem>>, %arg13: memref<1x1x64xf32, #tpu.memory_space<vmem>>, %arg14: memref<1x64x32xf32, #tpu.memory_space<vmem>>, %arg15: memref<1x1x32xf32, #tpu.memory_space<vmem>>, %arg16: memref<1x1x32xf32, #tpu.memory_space<vmem>>, %arg17: memref<1x1x32xf32, #tpu.memory_space<vmem>>, %arg18: memref<32x32xf32, #tpu.memory_space<vmem>>, %arg19: memref<1x32xf32, #tpu.memory_space<vmem>>, %arg20: memref<1x8x32xf32, #tpu.memory_space<vmem>>, %arg21: memref<1x1x32xf32, #tpu.memory_space<vmem>>, %arg22: memref<8x32xf32, #tpu.memory_space<vmem>>) attributes {dimension_semantics = [#tpu.dimension_semantics<parallel>, #tpu.dimension_semantics<arbitrary>], iteration_bounds = array<i64: 2, 2>, scalar_prefetch = 0 : i64, scratch_operands = 1 : i64, tpu.core_type = #tpu.core_type<tc>, window_params = [{transform_indices = @transform_0, window_bounds = array<i64: 1, 8, 32>}, {transform_indices = @transform_1, window_bounds = array<i64: 1, 1, 8>}, {pipeline_mode = #tpu.pipeline_mode<synchronous>, transform_indices = @transform_2, window_bounds = array<i64: 1, 32>}, {pipeline_mode = #tpu.pipeline_mode<synchronous>, transform_indices = @transform_3, window_bounds = array<i64: 1, 32>}, {transform_indices = @transform_4, window_bounds = array<i64: 1, 32, 96>}, {transform_indices = @transform_5, window_bounds = array<i64: 1, 1, 96>}, {transform_indices = @transform_6, window_bounds = array<i64: 1, 32, 32>}, {transform_indices = @transform_7, window_bounds = array<i64: 1, 1, 32>}, {transform_indices = @transform_8, window_bounds = array<i64: 1, 1, 32>}, {transform_indices = @transform_9, window_bounds = array<i64: 1, 1, 32>}, {transform_indices = @transform_10, window_bounds = array<i64: 1, 32, 64>}, {transform_indices = @transform_11, window_bounds = array<i64: 1, 1, 64>}, {transform_indices = @transform_12, window_bounds = array<i64: 1, 64, 32>}, {transform_indices = @transform_13, window_bounds = array<i64: 1, 1, 32>}, {transform_indices = @transform_14, window_bounds = array<i64: 1, 1, 32>}, {transform_indices = @transform_15, window_bounds = array<i64: 1, 1, 32>}, {pipeline_mode = #tpu.pipeline_mode<synchronous>, transform_indices = @transform_16, window_bounds = array<i64: 32, 32>}, {pipeline_mode = #tpu.pipeline_mode<synchronous>, transform_indices = @transform_17, window_bounds = array<i64: 1, 32>}, {transform_indices = @transform_18, window_bounds = array<i64: 1, 8, 32>}, {transform_indices = @transform_19, window_bounds = array<i64: 1, 1, 32>}]} {
    %c0_i32 = arith.constant 0 : i32
    %0 = arith.cmpi eq, %arg1, %c0_i32 : i32
    %1 = arith.extui %0 : i1 to i32
    %c0_i32_0 = arith.constant 0 : i32
    %2 = arith.cmpi ne, %1, %c0_i32_0 : i32
    scf.if %2 {
      %c0_81 = arith.constant 0 : index
      %c0_82 = arith.constant 0 : index
      %c0_83 = arith.constant 0 : index
      %181 = vector.load %arg2[%c0_81, %c0_82, %c0_83] : memref<1x8x32xf32, #tpu.memory_space<vmem>>, vector<1x8x32xf32>
      %182 = vector.shape_cast %181 : vector<1x8x32xf32> to vector<8x32xf32>
      %c0_84 = arith.constant 0 : index
      %c0_85 = arith.constant 0 : index
      %183 = vector.load %arg4[%c0_84, %c0_85] : memref<1x32xf32, #tpu.memory_space<vmem>>, vector<1x32xf32>
      %c0_86 = arith.constant 0 : index
      %c0_87 = arith.constant 0 : index
      %184 = vector.load %arg5[%c0_86, %c0_87] : memref<1x32xf32, #tpu.memory_space<vmem>>, vector<1x32xf32>
      %cst_88 = arith.constant dense<0.000000e+00> : vector<8xf32>
      %185 = vector.multi_reduction <add>, %182, %cst_88 [1] : vector<8x32xf32> to vector<8xf32>
      %186 = vector.shape_cast %185 : vector<8xf32> to vector<8x1xf32>
      %cst_89 = arith.constant 3.200000e+01 : f32
      %187 = vector.broadcast %cst_89 : f32 to vector<8x1xf32>
      %188 = arith.divf %186, %187 : vector<8x1xf32>
      %189 = vector.broadcast %188 : vector<8x1xf32> to vector<8x32xf32>
      %190 = arith.subf %182, %189 : vector<8x32xf32>
      %191 = arith.mulf %190, %190 : vector<8x32xf32>
      %cst_90 = arith.constant dense<0.000000e+00> : vector<8xf32>
      %192 = vector.multi_reduction <add>, %191, %cst_90 [1] : vector<8x32xf32> to vector<8xf32>
      %193 = vector.shape_cast %192 : vector<8xf32> to vector<8x1xf32>
      %cst_91 = arith.constant 3.200000e+01 : f32
      %194 = vector.broadcast %cst_91 : f32 to vector<8x1xf32>
      %195 = arith.divf %193, %194 : vector<8x1xf32>
      %cst_92 = arith.constant 9.99999996E-13 : f32
      %196 = vector.broadcast %cst_92 : f32 to vector<8x1xf32>
      %197 = arith.addf %195, %196 : vector<8x1xf32>
      %198 = math.rsqrt %197 : vector<8x1xf32>
      %199 = vector.broadcast %198 : vector<8x1xf32> to vector<8x32xf32>
      %200 = arith.mulf %190, %199 : vector<8x32xf32>
      %201 = vector.broadcast %183 : vector<1x32xf32> to vector<8x32xf32>
      %202 = arith.mulf %200, %201 : vector<8x32xf32>
      %203 = vector.broadcast %184 : vector<1x32xf32> to vector<8x32xf32>
      %204 = arith.addf %202, %203 : vector<8x32xf32>
      %c0_93 = arith.constant 0 : index
      %c0_94 = arith.constant 0 : index
      %205 = vector.load %arg22[%c0_93, %c0_94] : memref<8x32xf32, #tpu.memory_space<vmem>>, vector<8x32xf32>
      tpu.vector_store %arg22[%c0_93, %c0_94], %204 {strides = array<i32>} : memref<8x32xf32, #tpu.memory_space<vmem>>, vector<8x32xf32>,
    } else {
    }
    %c0 = arith.constant 0 : index
    %c0_1 = arith.constant 0 : index
    %3 = vector.load %arg22[%c0, %c0_1] : memref<8x32xf32, #tpu.memory_space<vmem>>, vector<8x32xf32>
    %c0_2 = arith.constant 0 : index
    %c0_3 = arith.constant 0 : index
    %c0_4 = arith.constant 0 : index
    %4 = vector.load %arg3[%c0_2, %c0_3, %c0_4] : memref<1x1x8xf32, #tpu.memory_space<vmem>>, vector<1x1x8xf32>
    %5 = vector.shape_cast %4 : vector<1x1x8xf32> to vector<1x8xf32>
    %c0_5 = arith.constant 0 : index
    %c0_6 = arith.constant 0 : index
    %c0_7 = arith.constant 0 : index
    %6 = vector.load %arg6[%c0_5, %c0_6, %c0_7] : memref<1x32x96xf32, #tpu.memory_space<vmem>>, vector<1x32x96xf32>
    %7 = vector.shape_cast %6 : vector<1x32x96xf32> to vector<32x96xf32>
    %cst = arith.constant dense<0.000000e+00> : vector<8x96xf32>
    %8 = tpu.matmul %3, %7, %cst {dimension_numbers = #tpu.dot_dimension_numbers<[1], [0], [0], [1], [0, 0, 1, 1], [], []>} : vector<8x32xf32>, vector<32x96xf32>, vector<8x96xf32> -> vector<8x96xf32>
    %c0_8 = arith.constant 0 : index
    %c0_9 = arith.constant 0 : index
    %c0_10 = arith.constant 0 : index
    %9 = vector.load %arg7[%c0_8, %c0_9, %c0_10] : memref<1x1x96xf32, #tpu.memory_space<vmem>>, vector<1x1x96xf32>
    %10 = vector.shape_cast %9 : vector<1x1x96xf32> to vector<1x96xf32>
    %11 = vector.broadcast %10 : vector<1x96xf32> to vector<8x96xf32>
    %12 = arith.addf %8, %11 : vector<8x96xf32>
    %c0_11 = arith.constant 0 : index
    %c0_12 = arith.constant 0 : index
    %c0_13 = arith.constant 0 : index
    %13 = vector.load %arg8[%c0_11, %c0_12, %c0_13] : memref<1x32x32xf32, #tpu.memory_space<vmem>>, vector<1x32x32xf32>
    %14 = vector.shape_cast %13 : vector<1x32x32xf32> to vector<32x32xf32>
    %cst_14 = arith.constant 0.000000e+00 : f32
    %15 = vector.broadcast %cst_14 : f32 to vector<8x32xf32>
    %16 = vector.extract_strided_slice %12 {offsets = [0, 0], sizes = [8, 8], strides = [1, 1]} : vector<8x96xf32> to vector<8x8xf32>
    %17 = vector.extract_strided_slice %12 {offsets = [0, 32], sizes = [8, 8], strides = [1, 1]} : vector<8x96xf32> to vector<8x8xf32>
    %18 = vector.extract_strided_slice %12 {offsets = [0, 64], sizes = [8, 8], strides = [1, 1]} : vector<8x96xf32> to vector<8x8xf32>
    "tpu.trace_start"() <{level = 10 : i32, message = "qd,kd->qk"}> : () -> ()
    %cst_15 = arith.constant dense<0.000000e+00> : vector<8x8xf32>
    %19 = tpu.matmul %16, %17, %cst_15 {dimension_numbers = #tpu.dot_dimension_numbers<[1], [1], [0], [0], [0, 0, 1, 0], [], []>} : vector<8x8xf32>, vector<8x8xf32>, vector<8x8xf32> -> vector<8x8xf32>
    "tpu.trace_stop"() : () -> ()
    %20 = vector.broadcast %5 : vector<1x8xf32> to vector<8x8xf32>
    %21 = arith.addf %19, %20 : vector<8x8xf32>
    %cst_16 = arith.constant dense<0xFF800000> : vector<8xf32>
    %22 = vector.multi_reduction <maximumf>, %21, %cst_16 [1] : vector<8x8xf32> to vector<8xf32>
    %23 = vector.shape_cast %22 : vector<8xf32> to vector<8x1xf32>
    %24 = vector.broadcast %23 : vector<8x1xf32> to vector<8x8xf32>
    %25 = arith.subf %21, %24 : vector<8x8xf32>
    %26 = math.exp %25 : vector<8x8xf32>
    %cst_17 = arith.constant dense<0.000000e+00> : vector<8xf32>
    %27 = vector.multi_reduction <add>, %26, %cst_17 [1] : vector<8x8xf32> to vector<8xf32>
    %28 = vector.shape_cast %27 : vector<8xf32> to vector<8x1xf32>
    %29 = tpu.reciprocal %28 {approx = true} : vector<8x1xf32> -> vector<8x1xf32>
    %30 = vector.broadcast %29 : vector<8x1xf32> to vector<8x8xf32>
    %31 = arith.mulf %26, %30 : vector<8x8xf32>
    %cst_18 = arith.constant dense<0.000000e+00> : vector<8x8xf32>
    %32 = tpu.matmul %31, %18, %cst_18 {dimension_numbers = #tpu.dot_dimension_numbers<[1], [0], [0], [1], [0, 0, 1, 1], [], []>} : vector<8x8xf32>, vector<8x8xf32>, vector<8x8xf32> -> vector<8x8xf32>
    %33 = vector.extract_strided_slice %14 {offsets = [0, 0], sizes = [8, 32], strides = [1, 1]} : vector<32x32xf32> to vector<8x32xf32>
    %cst_19 = arith.constant dense<0.000000e+00> : vector<8x32xf32>
    %34 = tpu.matmul %32, %33, %cst_19 {dimension_numbers = #tpu.dot_dimension_numbers<[1], [0], [0], [1], [0, 0, 1, 1], [], []>} : vector<8x8xf32>, vector<8x32xf32>, vector<8x32xf32> -> vector<8x32xf32>
    %35 = arith.addf %15, %34 : vector<8x32xf32>
    %36 = vector.extract_strided_slice %12 {offsets = [0, 8], sizes = [8, 8], strides = [1, 1]} : vector<8x96xf32> to vector<8x8xf32>
    %37 = vector.extract_strided_slice %12 {offsets = [0, 40], sizes = [8, 8], strides = [1, 1]} : vector<8x96xf32> to vector<8x8xf32>
    %38 = vector.extract_strided_slice %12 {offsets = [0, 72], sizes = [8, 8], strides = [1, 1]} : vector<8x96xf32> to vector<8x8xf32>
    "tpu.trace_start"() <{level = 10 : i32, message = "qd,kd->qk"}> : () -> ()
    %cst_20 = arith.constant dense<0.000000e+00> : vector<8x8xf32>
    %39 = tpu.matmul %36, %37, %cst_20 {dimension_numbers = #tpu.dot_dimension_numbers<[1], [1], [0], [0], [0, 0, 1, 0], [], []>} : vector<8x8xf32>, vector<8x8xf32>, vector<8x8xf32> -> vector<8x8xf32>
    "tpu.trace_stop"() : () -> ()
    %40 = vector.broadcast %5 : vector<1x8xf32> to vector<8x8xf32>
    %41 = arith.addf %39, %40 : vector<8x8xf32>
    %cst_21 = arith.constant dense<0xFF800000> : vector<8xf32>
    %42 = vector.multi_reduction <maximumf>, %41, %cst_21 [1] : vector<8x8xf32> to vector<8xf32>
    %43 = vector.shape_cast %42 : vector<8xf32> to vector<8x1xf32>
    %44 = vector.broadcast %43 : vector<8x1xf32> to vector<8x8xf32>
    %45 = arith.subf %41, %44 : vector<8x8xf32>
    %46 = math.exp %45 : vector<8x8xf32>
    %cst_22 = arith.constant dense<0.000000e+00> : vector<8xf32>
    %47 = vector.multi_reduction <add>, %46, %cst_22 [1] : vector<8x8xf32> to vector<8xf32>
    %48 = vector.shape_cast %47 : vector<8xf32> to vector<8x1xf32>
    %49 = tpu.reciprocal %48 {approx = true} : vector<8x1xf32> -> vector<8x1xf32>
    %50 = vector.broadcast %49 : vector<8x1xf32> to vector<8x8xf32>
    %51 = arith.mulf %46, %50 : vector<8x8xf32>
    %cst_23 = arith.constant dense<0.000000e+00> : vector<8x8xf32>
    %52 = tpu.matmul %51, %38, %cst_23 {dimension_numbers = #tpu.dot_dimension_numbers<[1], [0], [0], [1], [0, 0, 1, 1], [], []>} : vector<8x8xf32>, vector<8x8xf32>, vector<8x8xf32> -> vector<8x8xf32>
    %53 = vector.extract_strided_slice %14 {offsets = [8, 0], sizes = [8, 32], strides = [1, 1]} : vector<32x32xf32> to vector<8x32xf32>
    %cst_24 = arith.constant dense<0.000000e+00> : vector<8x32xf32>
    %54 = tpu.matmul %52, %53, %cst_24 {dimension_numbers = #tpu.dot_dimension_numbers<[1], [0], [0], [1], [0, 0, 1, 1], [], []>} : vector<8x8xf32>, vector<8x32xf32>, vector<8x32xf32> -> vector<8x32xf32>
    %55 = arith.addf %35, %54 : vector<8x32xf32>
    %56 = vector.extract_strided_slice %12 {offsets = [0, 16], sizes = [8, 8], strides = [1, 1]} : vector<8x96xf32> to vector<8x8xf32>
    %57 = vector.extract_strided_slice %12 {offsets = [0, 48], sizes = [8, 8], strides = [1, 1]} : vector<8x96xf32> to vector<8x8xf32>
    %58 = vector.extract_strided_slice %12 {offsets = [0, 80], sizes = [8, 8], strides = [1, 1]} : vector<8x96xf32> to vector<8x8xf32>
    "tpu.trace_start"() <{level = 10 : i32, message = "qd,kd->qk"}> : () -> ()
    %cst_25 = arith.constant dense<0.000000e+00> : vector<8x8xf32>
    %59 = tpu.matmul %56, %57, %cst_25 {dimension_numbers = #tpu.dot_dimension_numbers<[1], [1], [0], [0], [0, 0, 1, 0], [], []>} : vector<8x8xf32>, vector<8x8xf32>, vector<8x8xf32> -> vector<8x8xf32>
    "tpu.trace_stop"() : () -> ()
    %60 = vector.broadcast %5 : vector<1x8xf32> to vector<8x8xf32>
    %61 = arith.addf %59, %60 : vector<8x8xf32>
    %cst_26 = arith.constant dense<0xFF800000> : vector<8xf32>
    %62 = vector.multi_reduction <maximumf>, %61, %cst_26 [1] : vector<8x8xf32> to vector<8xf32>
    %63 = vector.shape_cast %62 : vector<8xf32> to vector<8x1xf32>
    %64 = vector.broadcast %63 : vector<8x1xf32> to vector<8x8xf32>
    %65 = arith.subf %61, %64 : vector<8x8xf32>
    %66 = math.exp %65 : vector<8x8xf32>
    %cst_27 = arith.constant dense<0.000000e+00> : vector<8xf32>
    %67 = vector.multi_reduction <add>, %66, %cst_27 [1] : vector<8x8xf32> to vector<8xf32>
    %68 = vector.shape_cast %67 : vector<8xf32> to vector<8x1xf32>
    %69 = tpu.reciprocal %68 {approx = true} : vector<8x1xf32> -> vector<8x1xf32>
    %70 = vector.broadcast %69 : vector<8x1xf32> to vector<8x8xf32>
    %71 = arith.mulf %66, %70 : vector<8x8xf32>
    %cst_28 = arith.constant dense<0.000000e+00> : vector<8x8xf32>
    %72 = tpu.matmul %71, %58, %cst_28 {dimension_numbers = #tpu.dot_dimension_numbers<[1], [0], [0], [1], [0, 0, 1, 1], [], []>} : vector<8x8xf32>, vector<8x8xf32>, vector<8x8xf32> -> vector<8x8xf32>
    %73 = vector.extract_strided_slice %14 {offsets = [16, 0], sizes = [8, 32], strides = [1, 1]} : vector<32x32xf32> to vector<8x32xf32>
    %cst_29 = arith.constant dense<0.000000e+00> : vector<8x32xf32>
    %74 = tpu.matmul %72, %73, %cst_29 {dimension_numbers = #tpu.dot_dimension_numbers<[1], [0], [0], [1], [0, 0, 1, 1], [], []>} : vector<8x8xf32>, vector<8x32xf32>, vector<8x32xf32> -> vector<8x32xf32>
    %75 = arith.addf %55, %74 : vector<8x32xf32>
    %76 = vector.extract_strided_slice %12 {offsets = [0, 24], sizes = [8, 8], strides = [1, 1]} : vector<8x96xf32> to vector<8x8xf32>
    %77 = vector.extract_strided_slice %12 {offsets = [0, 56], sizes = [8, 8], strides = [1, 1]} : vector<8x96xf32> to vector<8x8xf32>
    %78 = vector.extract_strided_slice %12 {offsets = [0, 88], sizes = [8, 8], strides = [1, 1]} : vector<8x96xf32> to vector<8x8xf32>
    "tpu.trace_start"() <{level = 10 : i32, message = "qd,kd->qk"}> : () -> ()
    %cst_30 = arith.constant dense<0.000000e+00> : vector<8x8xf32>
    %79 = tpu.matmul %76, %77, %cst_30 {dimension_numbers = #tpu.dot_dimension_numbers<[1], [1], [0], [0], [0, 0, 1, 0], [], []>} : vector<8x8xf32>, vector<8x8xf32>, vector<8x8xf32> -> vector<8x8xf32>
    "tpu.trace_stop"() : () -> ()
    %80 = vector.broadcast %5 : vector<1x8xf32> to vector<8x8xf32>
    %81 = arith.addf %79, %80 : vector<8x8xf32>
    %cst_31 = arith.constant dense<0xFF800000> : vector<8xf32>
    %82 = vector.multi_reduction <maximumf>, %81, %cst_31 [1] : vector<8x8xf32> to vector<8xf32>
    %83 = vector.shape_cast %82 : vector<8xf32> to vector<8x1xf32>
    %84 = vector.broadcast %83 : vector<8x1xf32> to vector<8x8xf32>
    %85 = arith.subf %81, %84 : vector<8x8xf32>
    %86 = math.exp %85 : vector<8x8xf32>
    %cst_32 = arith.constant dense<0.000000e+00> : vector<8xf32>
    %87 = vector.multi_reduction <add>, %86, %cst_32 [1] : vector<8x8xf32> to vector<8xf32>
    %88 = vector.shape_cast %87 : vector<8xf32> to vector<8x1xf32>
    %89 = tpu.reciprocal %88 {approx = true} : vector<8x1xf32> -> vector<8x1xf32>
    %90 = vector.broadcast %89 : vector<8x1xf32> to vector<8x8xf32>
    %91 = arith.mulf %86, %90 : vector<8x8xf32>
    %cst_33 = arith.constant dense<0.000000e+00> : vector<8x8xf32>
    %92 = tpu.matmul %91, %78, %cst_33 {dimension_numbers = #tpu.dot_dimension_numbers<[1], [0], [0], [1], [0, 0, 1, 1], [], []>} : vector<8x8xf32>, vector<8x8xf32>, vector<8x8xf32> -> vector<8x8xf32>
    %93 = vector.extract_strided_slice %14 {offsets = [24, 0], sizes = [8, 32], strides = [1, 1]} : vector<32x32xf32> to vector<8x32xf32>
    %cst_34 = arith.constant dense<0.000000e+00> : vector<8x32xf32>
    %94 = tpu.matmul %92, %93, %cst_34 {dimension_numbers = #tpu.dot_dimension_numbers<[1], [0], [0], [1], [0, 0, 1, 1], [], []>} : vector<8x8xf32>, vector<8x32xf32>, vector<8x32xf32> -> vector<8x32xf32>
    %95 = arith.addf %75, %94 : vector<8x32xf32>
    %c0_35 = arith.constant 0 : index
    %c0_36 = arith.constant 0 : index
    %c0_37 = arith.constant 0 : index
    %96 = vector.load %arg9[%c0_35, %c0_36, %c0_37] : memref<1x1x32xf32, #tpu.memory_space<vmem>>, vector<1x1x32xf32>
    %97 = vector.shape_cast %96 : vector<1x1x32xf32> to vector<1x32xf32>
    %98 = vector.broadcast %97 : vector<1x32xf32> to vector<8x32xf32>
    %99 = arith.addf %95, %98 : vector<8x32xf32>
    %100 = arith.addf %99, %3 : vector<8x32xf32>
    %c0_38 = arith.constant 0 : index
    %c0_39 = arith.constant 0 : index
    %c0_40 = arith.constant 0 : index
    %101 = vector.load %arg10[%c0_38, %c0_39, %c0_40] : memref<1x1x32xf32, #tpu.memory_space<vmem>>, vector<1x1x32xf32>
    %102 = vector.shape_cast %101 : vector<1x1x32xf32> to vector<1x32xf32>
    %c0_41 = arith.constant 0 : index
    %c0_42 = arith.constant 0 : index
    %c0_43 = arith.constant 0 : index
    %103 = vector.load %arg11[%c0_41, %c0_42, %c0_43] : memref<1x1x32xf32, #tpu.memory_space<vmem>>, vector<1x1x32xf32>
    %104 = vector.shape_cast %103 : vector<1x1x32xf32> to vector<1x32xf32>
    %cst_44 = arith.constant dense<0.000000e+00> : vector<8xf32>
    %105 = vector.multi_reduction <add>, %100, %cst_44 [1] : vector<8x32xf32> to vector<8xf32>
    %106 = vector.shape_cast %105 : vector<8xf32> to vector<8x1xf32>
    %cst_45 = arith.constant 3.200000e+01 : f32
    %107 = vector.broadcast %cst_45 : f32 to vector<8x1xf32>
    %108 = arith.divf %106, %107 : vector<8x1xf32>
    %109 = vector.broadcast %108 : vector<8x1xf32> to vector<8x32xf32>
    %110 = arith.subf %100, %109 : vector<8x32xf32>
    %111 = arith.mulf %110, %110 : vector<8x32xf32>
    %cst_46 = arith.constant dense<0.000000e+00> : vector<8xf32>
    %112 = vector.multi_reduction <add>, %111, %cst_46 [1] : vector<8x32xf32> to vector<8xf32>
    %113 = vector.shape_cast %112 : vector<8xf32> to vector<8x1xf32>
    %cst_47 = arith.constant 3.200000e+01 : f32
    %114 = vector.broadcast %cst_47 : f32 to vector<8x1xf32>
    %115 = arith.divf %113, %114 : vector<8x1xf32>
    %cst_48 = arith.constant 9.99999996E-13 : f32
    %116 = vector.broadcast %cst_48 : f32 to vector<8x1xf32>
    %117 = arith.addf %115, %116 : vector<8x1xf32>
    %118 = math.rsqrt %117 : vector<8x1xf32>
    %119 = vector.broadcast %118 : vector<8x1xf32> to vector<8x32xf32>
    %120 = arith.mulf %110, %119 : vector<8x32xf32>
    %121 = vector.broadcast %102 : vector<1x32xf32> to vector<8x32xf32>
    %122 = arith.mulf %120, %121 : vector<8x32xf32>
    %123 = vector.broadcast %104 : vector<1x32xf32> to vector<8x32xf32>
    %124 = arith.addf %122, %123 : vector<8x32xf32>
    %c0_49 = arith.constant 0 : index
    %c0_50 = arith.constant 0 : index
    %c0_51 = arith.constant 0 : index
    %125 = vector.load %arg12[%c0_49, %c0_50, %c0_51] : memref<1x32x64xf32, #tpu.memory_space<vmem>>, vector<1x32x64xf32>
    %126 = vector.shape_cast %125 : vector<1x32x64xf32> to vector<32x64xf32>
    %cst_52 = arith.constant dense<0.000000e+00> : vector<8x64xf32>
    %127 = tpu.matmul %124, %126, %cst_52 {dimension_numbers = #tpu.dot_dimension_numbers<[1], [0], [0], [1], [0, 0, 1, 1], [], []>} : vector<8x32xf32>, vector<32x64xf32>, vector<8x64xf32> -> vector<8x64xf32>
    %c0_53 = arith.constant 0 : index
    %c0_54 = arith.constant 0 : index
    %c0_55 = arith.constant 0 : index
    %128 = vector.load %arg13[%c0_53, %c0_54, %c0_55] : memref<1x1x64xf32, #tpu.memory_space<vmem>>, vector<1x1x64xf32>
    %129 = vector.shape_cast %128 : vector<1x1x64xf32> to vector<1x64xf32>
    %130 = vector.broadcast %129 : vector<1x64xf32> to vector<8x64xf32>
    %131 = arith.addf %127, %130 : vector<8x64xf32>
    %cst_56 = arith.constant 5.000000e-01 : f32
    %132 = vector.broadcast %cst_56 : f32 to vector<8x64xf32>
    %133 = arith.mulf %132, %131 : vector<8x64xf32>
    %cst_57 = arith.constant 4.471500e-02 : f32
    %134 = vector.broadcast %cst_57 : f32 to vector<8x64xf32>
    %135 = arith.mulf %134, %131 : vector<8x64xf32>
    %136 = arith.mulf %135, %131 : vector<8x64xf32>
    %137 = arith.mulf %136, %131 : vector<8x64xf32>
    %138 = arith.addf %131, %137 : vector<8x64xf32>
    %cst_58 = arith.constant 0.797884583 : f32
    %139 = vector.broadcast %cst_58 : f32 to vector<8x64xf32>
    %140 = arith.mulf %139, %138 : vector<8x64xf32>
    %141 = math.tanh %140 : vector<8x64xf32>
    %cst_59 = arith.constant 1.000000e+00 : f32
    %142 = vector.broadcast %cst_59 : f32 to vector<8x64xf32>
    %143 = arith.addf %142, %141 : vector<8x64xf32>
    %144 = arith.mulf %133, %143 : vector<8x64xf32>
    %c0_60 = arith.constant 0 : index
    %c0_61 = arith.constant 0 : index
    %c0_62 = arith.constant 0 : index
    %145 = vector.load %arg14[%c0_60, %c0_61, %c0_62] : memref<1x64x32xf32, #tpu.memory_space<vmem>>, vector<1x64x32xf32>
    %146 = vector.shape_cast %145 : vector<1x64x32xf32> to vector<64x32xf32>
    %cst_63 = arith.constant dense<0.000000e+00> : vector<8x32xf32>
    %147 = tpu.matmul %144, %146, %cst_63 {dimension_numbers = #tpu.dot_dimension_numbers<[1], [0], [0], [1], [0, 0, 1, 1], [], []>} : vector<8x64xf32>, vector<64x32xf32>, vector<8x32xf32> -> vector<8x32xf32>
    %c0_64 = arith.constant 0 : index
    %c0_65 = arith.constant 0 : index
    %c0_66 = arith.constant 0 : index
    %148 = vector.load %arg15[%c0_64, %c0_65, %c0_66] : memref<1x1x32xf32, #tpu.memory_space<vmem>>, vector<1x1x32xf32>
    %149 = vector.shape_cast %148 : vector<1x1x32xf32> to vector<1x32xf32>
    %150 = vector.broadcast %149 : vector<1x32xf32> to vector<8x32xf32>
    %151 = arith.addf %147, %150 : vector<8x32xf32>
    %152 = arith.addf %151, %124 : vector<8x32xf32>
    %c0_67 = arith.constant 0 : index
    %c0_68 = arith.constant 0 : index
    %c0_69 = arith.constant 0 : index
    %153 = vector.load %arg16[%c0_67, %c0_68, %c0_69] : memref<1x1x32xf32, #tpu.memory_space<vmem>>, vector<1x1x32xf32>
    %154 = vector.shape_cast %153 : vector<1x1x32xf32> to vector<1x32xf32>
    %c0_70 = arith.constant 0 : index
    %c0_71 = arith.constant 0 : index
    %c0_72 = arith.constant 0 : index
    %155 = vector.load %arg17[%c0_70, %c0_71, %c0_72] : memref<1x1x32xf32, #tpu.memory_space<vmem>>, vector<1x1x32xf32>
    %156 = vector.shape_cast %155 : vector<1x1x32xf32> to vector<1x32xf32>
    %cst_73 = arith.constant dense<0.000000e+00> : vector<8xf32>
    %157 = vector.multi_reduction <add>, %152, %cst_73 [1] : vector<8x32xf32> to vector<8xf32>
    %158 = vector.shape_cast %157 : vector<8xf32> to vector<8x1xf32>
    %cst_74 = arith.constant 3.200000e+01 : f32
    %159 = vector.broadcast %cst_74 : f32 to vector<8x1xf32>
    %160 = arith.divf %158, %159 : vector<8x1xf32>
    %161 = vector.broadcast %160 : vector<8x1xf32> to vector<8x32xf32>
    %162 = arith.subf %152, %161 : vector<8x32xf32>
    %163 = arith.mulf %162, %162 : vector<8x32xf32>
    %cst_75 = arith.constant dense<0.000000e+00> : vector<8xf32>
    %164 = vector.multi_reduction <add>, %163, %cst_75 [1] : vector<8x32xf32> to vector<8xf32>
    %165 = vector.shape_cast %164 : vector<8xf32> to vector<8x1xf32>
    %cst_76 = arith.constant 3.200000e+01 : f32
    %166 = vector.broadcast %cst_76 : f32 to vector<8x1xf32>
    %167 = arith.divf %165, %166 : vector<8x1xf32>
    %cst_77 = arith.constant 9.99999996E-13 : f32
    %168 = vector.broadcast %cst_77 : f32 to vector<8x1xf32>
    %169 = arith.addf %167, %168 : vector<8x1xf32>
    %170 = math.rsqrt %169 : vector<8x1xf32>
    %171 = vector.broadcast %170 : vector<8x1xf32> to vector<8x32xf32>
    %172 = arith.mulf %162, %171 : vector<8x32xf32>
    %173 = vector.broadcast %154 : vector<1x32xf32> to vector<8x32xf32>
    %174 = arith.mulf %172, %173 : vector<8x32xf32>
    %175 = vector.broadcast %156 : vector<1x32xf32> to vector<8x32xf32>
    %176 = arith.addf %174, %175 : vector<8x32xf32>
    %c0_78 = arith.constant 0 : index
    %c0_79 = arith.constant 0 : index
    %177 = vector.load %arg22[%c0_78, %c0_79] : memref<8x32xf32, #tpu.memory_space<vmem>>, vector<8x32xf32>
    tpu.vector_store %arg22[%c0_78, %c0_79], %176 {strides = array<i32>} : memref<8x32xf32, #tpu.memory_space<vmem>>, vector<8x32xf32>,
    %c1_i32 = arith.constant 1 : i32
    %178 = arith.cmpi eq, %arg1, %c1_i32 : i32
    %179 = arith.extui %178 : i1 to i32
    %c0_i32_80 = arith.constant 0 : i32
    %180 = arith.cmpi ne, %179, %c0_i32_80 : i32
    scf.if %180 {
      %c0_81 = arith.constant 0 : index
      %c0_82 = arith.constant 0 : index
      %c0_83 = arith.constant 0 : index
      %181 = vector.load %arg20[%c0_81, %c0_82, %c0_83] : memref<1x8x32xf32, #tpu.memory_space<vmem>>, vector<1x8x32xf32>
      %182 = vector.shape_cast %181 : vector<1x8x32xf32> to vector<8x32xf32>
      %183 = vector.shape_cast %176 : vector<8x32xf32> to vector<1x8x32xf32>
      tpu.vector_store %arg20[%c0_81, %c0_82, %c0_83], %183 {strides = array<i32>} : memref<1x8x32xf32, #tpu.memory_space<vmem>>, vector<1x8x32xf32>,
      %184 = vector.extract_strided_slice %176 {offsets = [0, 0], sizes = [1, 32], strides = [1, 1]} : vector<8x32xf32> to vector<1x32xf32>
      %c0_84 = arith.constant 0 : index
      %c0_85 = arith.constant 0 : index
      %185 = vector.load %arg18[%c0_84, %c0_85] : memref<32x32xf32, #tpu.memory_space<vmem>>, vector<32x32xf32>
      %cst_86 = arith.constant dense<0.000000e+00> : vector<1x32xf32>
      %186 = tpu.matmul %184, %185, %cst_86 {dimension_numbers = #tpu.dot_dimension_numbers<[1], [0], [0], [1], [0, 0, 1, 1], [], []>} : vector<1x32xf32>, vector<32x32xf32>, vector<1x32xf32> -> vector<1x32xf32>
      %c0_87 = arith.constant 0 : index
      %c0_88 = arith.constant 0 : index
      %187 = vector.load %arg19[%c0_87, %c0_88] : memref<1x32xf32, #tpu.memory_space<vmem>>, vector<1x32xf32>
      %188 = arith.addf %186, %187 : vector<1x32xf32>
      %189 = math.tanh %188 : vector<1x32xf32>
      %c0_89 = arith.constant 0 : index
      %c0_90 = arith.constant 0 : index
      %c0_91 = arith.constant 0 : index
      %190 = vector.load %arg21[%c0_89, %c0_90, %c0_91] : memref<1x1x32xf32, #tpu.memory_space<vmem>>, vector<1x1x32xf32>
      %191 = vector.shape_cast %190 : vector<1x1x32xf32> to vector<1x32xf32>
      %192 = vector.shape_cast %189 : vector<1x32xf32> to vector<1x1x32xf32>
      tpu.vector_store %arg21[%c0_89, %c0_90, %c0_91], %192 {strides = array<i32>} : memref<1x1x32xf32, #tpu.memory_space<vmem>>, vector<1x1x32xf32>,
    } else {
    }
    return
  }
  func.func @transform_0(%arg0: i32, %arg1: i32) -> (i32, i32, i32) {
    %c0_i32 = arith.constant 0 : i32
    %c0_i32_0 = arith.constant 0 : i32
    %c0_i32_1 = arith.constant 0 : i32
    return %arg0, %c0_i32, %c0_i32_0 : i32, i32, i32
  }
  func.func @transform_1(%arg0: i32, %arg1: i32) -> (i32, i32, i32) {
    %c0_i32 = arith.constant 0 : i32
    %c0_i32_0 = arith.constant 0 : i32
    %c0_i32_1 = arith.constant 0 : i32
    return %arg0, %c0_i32, %c0_i32_0 : i32, i32, i32
  }
  func.func @transform_2(%arg0: i32, %arg1: i32) -> (i32, i32) {
    %c0_i32 = arith.constant 0 : i32
    %c0_i32_0 = arith.constant 0 : i32
    %c0_i32_1 = arith.constant 0 : i32
    return %c0_i32, %c0_i32_0 : i32, i32
  }
  func.func @transform_3(%arg0: i32, %arg1: i32) -> (i32, i32) {
    %c0_i32 = arith.constant 0 : i32
    %c0_i32_0 = arith.constant 0 : i32
    %c0_i32_1 = arith.constant 0 : i32
    return %c0_i32, %c0_i32_0 : i32, i32
  }
  func.func @transform_4(%arg0: i32, %arg1: i32) -> (i32, i32, i32) {
    %c0_i32 = arith.constant 0 : i32
    %c0_i32_0 = arith.constant 0 : i32
    %c0_i32_1 = arith.constant 0 : i32
    return %arg1, %c0_i32, %c0_i32_0 : i32, i32, i32
  }
  func.func @transform_5(%arg0: i32, %arg1: i32) -> (i32, i32, i32) {
    %c0_i32 = arith.constant 0 : i32
    %c0_i32_0 = arith.constant 0 : i32
    %c0_i32_1 = arith.constant 0 : i32
    return %arg1, %c0_i32, %c0_i32_0 : i32, i32, i32
  }
  func.func @transform_6(%arg0: i32, %arg1: i32) -> (i32, i32, i32) {
    %c0_i32 = arith.constant 0 : i32
    %c0_i32_0 = arith.constant 0 : i32
    %c0_i32_1 = arith.constant 0 : i32
    return %arg1, %c0_i32, %c0_i32_0 : i32, i32, i32
  }
  func.func @transform_7(%arg0: i32, %arg1: i32) -> (i32, i32, i32) {
    %c0_i32 = arith.constant 0 : i32
    %c0_i32_0 = arith.constant 0 : i32
    %c0_i32_1 = arith.constant 0 : i32
    return %arg1, %c0_i32, %c0_i32_0 : i32, i32, i32
  }
  func.func @transform_8(%arg0: i32, %arg1: i32) -> (i32, i32, i32) {
    %c0_i32 = arith.constant 0 : i32
    %c0_i32_0 = arith.constant 0 : i32
    %c0_i32_1 = arith.constant 0 : i32
    return %arg1, %c0_i32, %c0_i32_0 : i32, i32, i32
  }
  func.func @transform_9(%arg0: i32, %arg1: i32) -> (i32, i32, i32) {
    %c0_i32 = arith.constant 0 : i32
    %c0_i32_0 = arith.constant 0 : i32
    %c0_i32_1 = arith.constant 0 : i32
    return %arg1, %c0_i32, %c0_i32_0 : i32, i32, i32
  }
  func.func @transform_10(%arg0: i32, %arg1: i32) -> (i32, i32, i32) {
    %c0_i32 = arith.constant 0 : i32
    %c0_i32_0 = arith.constant 0 : i32
    %c0_i32_1 = arith.constant 0 : i32
    return %arg1, %c0_i32, %c0_i32_0 : i32, i32, i32
  }
  func.func @transform_11(%arg0: i32, %arg1: i32) -> (i32, i32, i32) {
    %c0_i32 = arith.constant 0 : i32
    %c0_i32_0 = arith.constant 0 : i32
    %c0_i32_1 = arith.constant 0 : i32
    return %arg1, %c0_i32, %c0_i32_0 : i32, i32, i32
  }
  func.func @transform_12(%arg0: i32, %arg1: i32) -> (i32, i32, i32) {
    %c0_i32 = arith.constant 0 : i32
    %c0_i32_0 = arith.constant 0 : i32
    %c0_i32_1 = arith.constant 0 : i32
    return %arg1, %c0_i32, %c0_i32_0 : i32, i32, i32
  }
  func.func @transform_13(%arg0: i32, %arg1: i32) -> (i32, i32, i32) {
    %c0_i32 = arith.constant 0 : i32
    %c0_i32_0 = arith.constant 0 : i32
    %c0_i32_1 = arith.constant 0 : i32
    return %arg1, %c0_i32, %c0_i32_0 : i32, i32, i32
  }
  func.func @transform_14(%arg0: i32, %arg1: i32) -> (i32, i32, i32) {
    %c0_i32 = arith.constant 0 : i32
    %c0_i32_0 = arith.constant 0 : i32
    %c0_i32_1 = arith.constant 0 : i32
    return %arg1, %c0_i32, %c0_i32_0 : i32, i32, i32
  }
  func.func @transform_15(%arg0: i32, %arg1: i32) -> (i32, i32, i32) {
    %c0_i32 = arith.constant 0 : i32
    %c0_i32_0 = arith.constant 0 : i32
    %c0_i32_1 = arith.constant 0 : i32
    return %arg1, %c0_i32, %c0_i32_0 : i32, i32, i32
  }
  func.func @transform_16(%arg0: i32, %arg1: i32) -> (i32, i32) {
    %c0_i32 = arith.constant 0 : i32
    %c0_i32_0 = arith.constant 0 : i32
    %c0_i32_1 = arith.constant 0 : i32
    return %c0_i32, %c0_i32_0 : i32, i32
  }
  func.func @transform_17(%arg0: i32, %arg1: i32) -> (i32, i32) {
    %c0_i32 = arith.constant 0 : i32
    %c0_i32_0 = arith.constant 0 : i32
    %c0_i32_1 = arith.constant 0 : i32
    return %c0_i32, %c0_i32_0 : i32, i32
  }
  func.func @transform_18(%arg0: i32, %arg1: i32) -> (i32, i32, i32) {
    %c0_i32 = arith.constant 0 : i32
    %c0_i32_0 = arith.constant 0 : i32
    %c0_i32_1 = arith.constant 0 : i32
    return %arg0, %c0_i32, %c0_i32_0 : i32, i32, i32
  }
  func.func @transform_19(%arg0: i32, %arg1: i32) -> (i32, i32, i32) {
    %c0_i32 = arith.constant 0 : i32
    %c0_i32_0 = arith.constant 0 : i32
    %c0_i32_1 = arith.constant 0 : i32
    return %arg0, %c0_i32, %c0_i32_0 : i32, i32, i32
  }
}

</mosaic_0001>

<bundles_post_ra>
// kernel: bertology_forward.1
= control target key start
LH: loop header
LB: loop body
LE: loop exit
PB: predicated region body
PF: predicated region fallthrough
CT: control target
= control target key end

     0   :  { %s3508_s0 = inlined_call_operand.vmem [shape: f32[2,8,32], index: 0, kind: input, shape index: {}]   ;;  %s3509_s1 = inlined_call_operand.vmem [shape: f32[2,1,8], index: 1, kind: input, shape index: {}]   ;;  %s3510_s2 = inlined_call_operand.vmem [shape: f32[1,32], index: 2, kind: input, shape index: {}]   ;;  %s3511_s3 = inlined_call_operand.vmem [shape: f32[1,32], index: 3, kind: input, shape index: {}]   ;;  %s3512_s4 = inlined_call_operand.vmem [shape: f32[2,32,96], index: 4, kind: input, shape index: {}]   ;;  %s3513_s5 = inlined_call_operand.vmem [shape: f32[2,1,96], index: 5, kind: input, shape index: {}]   ;;  %s3514_s6 = inlined_call_operand.vmem [shape: f32[2,32,32], index: 6, kind: input, shape index: {}]   ;;  %s3515_s7 = inlined_call_operand.vmem [shape: f32[2,1,32], index: 7, kind: input, shape index: {}]   ;;  %s3516_s8 = inlined_call_operand.vmem [shape: f32[2,1,32], index: 8, kind: input, shape index: {}]   ;;  %s3517_s9 = inlined_call_operand.vmem [shape: f32[2,1,32], index: 9, kind: input, shape index: {}]   ;;  %s3518_s10 = inlined_call_operand.vmem [shape: f32[2,32,64], index: 10, kind: input, shape index: {}]   ;;  %s3519_s11 = inlined_call_operand.vmem [shape: f32[2,1,64], index: 11, kind: input, shape index: {}]   ;;  %s3520_s12 = inlined_call_operand.vmem [shape: f32[2,64,32], index: 12, kind: input, shape index: {}]   ;;  %s3521_s13 = inlined_call_operand.vmem [shape: f32[2,1,32], index: 13, kind: input, shape index: {}]   ;;  %s3522_s14 = inlined_call_operand.vmem [shape: f32[2,1,32], index: 14, kind: input, shape index: {}]   ;;  %s3523_s15 = inlined_call_operand.vmem [shape: f32[2,1,32], index: 15, kind: input, shape index: {}]   ;;  %s3524_s16 = inlined_call_operand.vmem [shape: f32[32,32], index: 16, kind: input, shape index: {}]   ;;  %s3525_s17 = inlined_call_operand.vmem [shape: f32[1,32], index: 17, kind: input, shape index: {}]   ;;  %s3526_s18 = inlined_call_operand.hbm [shape: f32[2,8,32], index: 18, kind: output, shape index: {0}]   ;;  %s3527_s19 = inlined_call_operand.hbm [shape: f32[2,1,32], index: 19, kind: output, shape index: {1}]  }
   0x1   :  { %3545 = sst [smem:[#allocation22_spill]] %s3508_s0 }
   0x2   :  { %3546 = sst [smem:[#allocation23_spill]] %s3509_s1 }
   0x3   :  { %3547 = sst [smem:[#allocation24_spill]] %s3510_s2 }
   0x4   :  { %3548 = sst [smem:[#allocation25_spill]] %s3511_s3 }
   0x5   :  { %3549 = sst [smem:[#allocation26_spill]] %s3512_s4 }
   0x6   :  { %3550 = sst [smem:[#allocation27_spill]] %s3514_s6 }
   0x7   :  { %3551 = sst [smem:[#allocation28_spill]] %s3516_s8 }
   0x8   :  { %3552 = sst [smem:[#allocation29_spill]] %s3517_s9 }
   0x9   :  { %3553 = sst [smem:[#allocation30_spill]] %s3518_s10 }
   0xa   :  { %3554 = sst [smem:[#allocation31_spill]] %s3520_s12 }
   0xb   :  { %3555 = sst [smem:[#allocation32_spill]] %s3522_s14 }
   0xc   :  { %3556 = sst [smem:[#allocation33_spill]] %s3523_s15 }
   0xd   :  { %3557 = sst [smem:[#allocation34_spill]] %s3524_s16 }
   0xe   :  { %3558 = sst [smem:[#allocation35_spill]] %s3525_s17 }
   0xf   :  { %3559 = sst [smem:[#allocation36_spill]] %s3526_s18 }
  0x10   :  { %3560 = sst [smem:[#allocation37_spill]] %s3527_s19 }
  0x11   :  { %25 = vsyncpa [#allocation4], 0 }
  0x12   :  { %27 = vsyncpa [#allocation4 + $0x1], 0 }
  0x13   :  { %28 = vsyncpa [#allocation6], 0 }
  0x14   :  { %30 = vsyncpa [#allocation6 + $0x1], 0  ;;  %s3085_s0 = smov 0   ;;  %s3087_s30 = smov 0  }
  0x15   :  { %s3089_s20 = smov 0   ;;  %s3091_s21 = smov 0  }
  0x16   :  { %s3093_s1 = smov 0   ;;  %s3095_s22 = smov 0  }
  0x17   :  { %s3097_s2 = smov 0   ;;  %s3099_s23 = smov 0  }
  0x18 LB: > { %3561 = sst [smem:[#allocation9_spill]] %s2938_s0  ;;  %s2510_s24 = sadd.s32 4294967295, %s2966_s23   ;;  %s2966_s23 = sphi %s3099_s23, %s36_s23   ;;  %s2962_s2 = sphi %s3097_s2, %s3618_s2   ;;  %s2958_s22 = sphi %s3095_s22, %s3617_s22   ;;  %s2954_s1 = sphi %s3093_s1, %s3616_s1   ;;  %s2950_s21 = sphi %s3091_s21, %s3615_s21   ;;  %s2946_s20 = sphi %s3089_s20, %s3614_s20   ;;  %s2942_s30 = sphi %s3087_s30, %s3613_s30   ;;  %s2938_s0 = sphi %s3085_s0, %s3612_s0  }
  0x19   : > { %3562 = sst [smem:[#allocation10_spill]] %s2942_s30  ;;  %s2511_s25 = sadd.s32 4294967294, %s2966_s23  }
  0x1a   : > { %3563 = sst [smem:[#allocation11_spill]] %s2946_s20  ;;  %s45_s3 = sadd.s32 1, %s2958_s22 }
  0x1b   : > { %3564 = sst [smem:[#allocation12_spill]] %s2950_s21  ;;  %p46_p0 = scmp.ge.s32.totalorder %s45_s3, 2 }
  0x1c   : > { %3565 = sst [smem:[#allocation13_spill]] %s2954_s1  ;;  %s48_s26 = sadd.s32 1, %s2962_s2 }
  0x1d   : > { %3566 = sst [smem:[#allocation14_spill]] %s2958_s22  ;;  %p513_p1 = scmp.ne.s32.totalorder %s2946_s20, %s2942_s30 }
  0x1e   : > { %3567 = sst [smem:[#allocation15_spill]] %s2962_s2  ;;  %p514_p2 = scmp.eq.s32.totalorder %s2510_s24, 3 }
  0x1f   : > { %3568 = sst [smem:[#allocation16_spill]] %s2966_s23  ;;  %s3620_s3 = smov (%p46_p0, %s45_s3), 0 }
  0x20   : > { %3569 = sst [smem:[#allocation17_spill]] %s3620_s3  ;;  %s3622_s26 = smov (!%p46_p0, %s48_s26), %s2962_s2 }
  0x21   : > { %p3134_p3 = por %p514_p2, %p513_p1  ;;  %p519_p4 = scmp.ne.s32.totalorder %s2942_s30, %s2938_s0 }
  0x22   : > { %p50_p5 = scmp.ge.s32.totalorder %s3622_s26, 2  ;;  %p520_p6 = scmp.eq.s32.totalorder %s2511_s25, 3 }
  0x23   : > { %s3570_s27 = scalar_select %p3134_p3, 1, 0 }
  0x24   : > { %p2514_p7 = scmp.ge.s32.totalorder %s2966_s23, 1  ;;  %p669_p8 = scmp.lt.s32.totalorder %s2966_s23, 5 }
  0x25   : > { %3571 = sst [smem:[#allocation18_spill]] %s3570_s27  ;;  %s3624_s26 = smov (%p50_p5, %s3622_s26), 0 }
  0x26   : > { %3572 = sst [smem:[#allocation19_spill]] %s3624_s26  ;;  %p3144_p9 = por %p520_p6, %p519_p4 }
  0x27   : > { %p670_p10 = pnand %p2514_p7, %p669_p8  ;;  %s500_s29 = ssub.s32 %s2962_s2, %s3624_s26 }
  0x28   : > { %s3573_s28 = scalar_select %p3144_p9, 1, 0 }
  0x29   : > { %s503_s24 = sadd.s32 1, %s2946_s20  ;;  %p501_p11 = scmp.eq.s32.totalorder %s500_s29, 0 }
  0x2a   : > { %3574 = sst [smem:[#allocation20_spill]] %s3573_s28  ;;  %673 = sbr.rel (%p670_p10) target bundleno = 4121 (0x1019), region = 92 }
  0x2b   : > { %s3152_s3 = scalar_select %p501_p11, %s2946_s20, %s503_s24  }
  0x2c   : > { %s3155_s25 = sand.u32 (!%p670_p10), 1, %s2942_s30   ;;  %p775_p12 = scmp.lt.s32.totalorder (!%p670_p10), %s2954_s1, 1 }
  0x2d   : > { %3575 = sst [smem:[#allocation21_spill]] %s3152_s3  ;;  %s2515_s22 = sshll.u32 (!%p670_p10), %s3155_s25, 3 }
  0x2e   : > { %p782_p13 = scmp.lt.s32.totalorder (!%p670_p10), %s2950_s21, 1  ;;  %s3577_s23 = sld [smem:[#allocation22_spill]] (!%p670_p10) }
  0x2f   : > { %s3161_s0 = scalar_select %p775_p12, %s2954_s1, 1 }
  0x30   : > { %s3164_s26 = scalar_select %p782_p13, %s2950_s21, 1 }
  0x31   : > { %s2516_s29 = sshll.u32 %s3161_s0, 3  ;;  %s3578_s4 = sld [smem:[#allocation26_spill]] }
  0x32   : > { %s2563_s18 = sshll.u32 %s3164_s26, 5  ;;  %s3579_s6 = sld [smem:[#allocation27_spill]] }
  0x33   : > { %s3582_s10 = sld [smem:[#allocation30_spill]]  ;;  %s819_s30 = scalar_lea.vmem %s3521_s13, %s3164_s26 }
  0x34   : > { %s778_s19 = scalar_lea.vmem %s3577_s23, %s2516_s29  ;;  %s3583_s29 = sld [smem:[#allocation31_spill]] }
  0x35   : > { %s3584_s20 = sld [smem:[#allocation32_spill]]  ;;  %s3228_s12 = scalar_lea.vmem [#allocation3], %s2515_s22 }
  0x36   : > { %s774_s14 = scalar_lea.vmem [#allocation5], %s3155_s25  ;;  %s3586_s15 = sld [smem:[#allocation12_spill]] }
  0x37   : > { %s3178_s17 = scalar_lea.vmem %s3578_s4, %s2563_s18 }
  0x38   : > { %s3187_s2 = scalar_lea.vmem %s3579_s6, %s2563_s18  ;;  %s2566_s6 = sshll.u32 %s3164_s26, 6 }
  0x39   : > { %s3204_s21 = scalar_lea.vmem %s3582_s10, %s2563_s18  ;;  %s3585_s10 = sld [smem:[#allocation33_spill]] }
  0x3a   : > { %s3218_s8 = scalar_lea.vmem %s3583_s29, %s2566_s6 }
  0x3b   : > { %s822_s4 = scalar_lea.vmem %s3584_s20, %s3164_s26 }
  0x3c   : > { %p2525_p0 = scmp.ne.s32.totalorder %s3586_s15, 0 }
  0x3d   : > { %s3587_s15 = sld [smem:[#allocation24_spill]] (!%p2525_p0) }
  0x3e   : > { %829 = sbr.rel (%p2525_p0) target bundleno = 377 (0x179), region = 96  ;;  %s3588_s22 = sld [smem:[#allocation25_spill]] (!%p2525_p0) }
  0x3f   : > { %s825_s9 = scalar_lea.vmem %s3585_s10, %s3164_s26 }
  0x43   : > { %v830_v0 = vld [vmem:[%s778_s19] sm:$0xff]  ;;  %vm833_vm0 = vcmask 261120  }
  0x44   : > { %v834_v1 = vsel %vm833_vm0, %v830_v0, 0.0  ;;  %v2526_v11 = vld [vmem:[%s3587_s15] ss:$0 sm:$0xff] }
  0x45   : > { %835 = vadd.xlane.f32.xlu0 %v834_v1  ;;  %v2527_v13 = vld [vmem:[%s3588_s22] ss:$0 sm:$0xff] }
  0xce   : > { %v836_v2 = vpop.xlane.xlu0 %835 }
  0xcf   : > { %v838_v3 = vmul.f32 0.03125, %v836_v2 }
  0xd1   : > { %v839_v4 = vsub.f32 %v830_v0, %v838_v3 }
  0xd3   : > { %v840_v5 = vmul.f32 %v839_v4, %v839_v4 }
  0xd5   : > { %v841_v6 = vsel %vm833_vm0, %v840_v5, 0.0 }
  0xd6   : > { %842 = vadd.xlane.f32.xlu0 %v841_v6 }
 0x15f   : > { %v843_v7 = vpop.xlane.xlu0 %842 }
 0x160   : > { %v844_v8 = vmul.f32 0.03125, %v843_v7 }
 0x162   : > { %v845_v9 = vadd.f32 1e-12, %v844_v8 }
 0x164   : > { %2818 = vrsqrt.f32 %v845_v9 }
 0x171   : > { %v2819_v10 = vpop.eup %2818 }
 0x172   : > { %v847_v12 = vmul.f32 %v2819_v10, %v839_v4 }
 0x174   : > { %v854_v14 = vmul.f32 %v2526_v11, %v847_v12 }
 0x176   : > { %v861_v15 = vadd.f32 %v2527_v13, %v854_v14 }
 0x178   : > { %862 = vst.msk [vmem:[#allocation2] sm:$0xff] %vm833_vm0, %v861_v15 }
 0x179 PF: > { %v868_v16 = vld [vmem:[%s3178_s17 + $0x18] sm:$0xff]  ;;  %v2968_v17 = vmov 0.0   ;;  %v867_v18 = vld [vmem:[%s3178_s17 + $0x10] sm:$0xff]  ;;  %vm2969_vm1 = vmmov 0   ;;  %v866_v19 = vld [vmem:[%s3178_s17 + $0x8] sm:$0xff]  ;;  %vm876_vm2 = vcmask 261120   ;;  %s3589_s24 = scalar_lea.vmem %s3513_s5, %s3164_s26 }
 0x17a   : > { %2615 = vmatprep.subr.mxu0 %v2968_v17  ;;  %2623 = vmatprep.mubr.msk.f32.mxu0 %vm2969_vm1, %v2968_v17  ;;  %v865_v20 = vld [vmem:[%s3178_s17] sm:$0xff]  ;;  %s2970_s17 = smov 120   ;;  %s2971_s23 = smov 96   ;;  %vm963_vm3 = vcmask 64512   ;;  %v951_v57 = vld [vmem:[%s3187_s2 + $0x8] sm:$0xff]  ;;  %vm2061_vm4 = vcmask 523264  }
 0x17b   : > { %2616 = vmatpush3.msra.mxu0 %v868_v16  ;;  %2631 = vmatprep.subr.mxu1 %v2968_v17  ;;  %v2528_v22 = vld [vmem:[%s3589_s24] ss:$0 sm:$0xff]  ;;  %s2972_s28 = smov 88   ;;  %s3590_s18 = sld [smem:[#allocation23_spill]] }
 0x17c   : > { %2617 = vmatprep.subr.mxu0 %v2968_v17  ;;  %2633 = vmatprep.mubr.msk.f32.mxu1 %vm2969_vm1, %v2968_v17  ;;  %s2974_s6 = smov 64   ;;  %s2975_s10 = smov 80   ;;  %v950_v56 = vld [vmem:[%s3187_s2] sm:$0xff] }
 0x17d   : > { %2618 = vmatpush3.msra.mxu0 %v867_v18  ;;  %s2976_s15 = smov 112   ;;  %s2977_s19 = smov 72  }
 0x17e   : > { %2619 = vmatprep.subr.mxu0 %v2968_v17  ;;  %s2978_s20 = smov 104   ;;  %s2979_s22 = smov 48  }
 0x17f   : > { %2620 = vmatpush3.msra.mxu0 %v866_v19  ;;  %v3253_v21 = vld [vmem:[#allocation2] sm:$0xff]  ;;  %s2980_s29 = smov 40   ;;  %s3592_s24 = scalar_lea.vmem %s3515_s7, %s3164_s26 }
 0x180   : > { %2621 = vmatprep.subr.mxu0 %v2968_v17  ;;  %s3600_s3 = sld [smem:[#allocation12_spill]] }
 0x181   : > { %2622 = vmatpush3.msra.mxu0 %v865_v20  ;;  %s3591_s16 = scalar_lea.vmem %s3590_s18, %s3161_s0  ;;  %s2973_s0 = smov 56  }
 0x182   : > { %2624 = vmatmul.mubr.msk.f32.vlgmr.msra.gmra.mxu0 %vm876_vm2, %v3253_v21  ;;  %2626 = vmatprep.subr.mxu0 %v2968_v17  ;;  %v3287_v29 = vld [vmem:[%s3591_s16] ss:$0 sm:$0xff]  ;;  %s3595_s18 = sld [smem:[#allocation29_spill]] }
 0x183   : > { %2628 = vmatprep.mubr.msk.f32.mxu0 %vm2969_vm1, %v2968_v17 }
 0x186   : > { %p2556_p1 = scmp.ne.s32.totalorder %s3600_s3, 1 }
 0x188   : > { %s3596_s16 = scalar_lea.vmem %s3595_s18, %s3164_s26 }
 0x242   : > { %v946_v23 = vpop.f32.mrf.mxu0 }
 0x243   : > { %v3266_v24 = vadd.f32 %v2528_v22, %v946_v23  ;;  %v952_v22 = vld [vmem:[%s3187_s2 + $0x10] sm:$0xff] }
 0x244   : > { %v2625_v25 = vpop.f32.mrf.mxu0 }
 0x245   : > { %1125 = vrot.lane.b32.xlu1 %v3266_v24, %s2970_s17  ;;  %961 = vrot.lane.b32.xlu0 %v3266_v24, %s2971_s23  ;;  %s3601_s23 = sld [smem:[#allocation34_spill]] (!%p2556_p1) }
 0x249   : > { %1127 = vrot.lane.b32.xlu0 %v3266_v24, %s2972_s28  ;;  %s3593_s28 = sld [smem:[#allocation28_spill]] }
 0x24f   : > { %s3594_s1 = scalar_lea.vmem %s3593_s28, %s3164_s26  ;;  %s3602_s28 = smov (!%p2556_p1), %s3601_s23 }
 0x2b7   : > { %v962_v26 = vpop.permute.xlu0 %961  ;;  %v1126_v28 = vpop.permute.xlu1 %1125 }
 0x2b8   : > { %2627 = vmatpush3.xpose.msk.msra.mxu0 %vm963_vm3, %v962_v26 }
 0x2b9   : > { %2636 = vmatprep.subr.mxu0 %v2968_v17 }
 0x2bb   : > { %2629 = vmatmul.mubr.msk.f32.vlgmr.msra.gmra.mxu0 %vm963_vm3, %v3266_v24  ;;  %v1128_v27 = vpop.permute.xlu0 %1127 }
 0x2bc   : > { %2637 = vmatpush3.xpose.msk.msra.mxu0 %vm963_vm3, %v1128_v27  ;;  %2638 = vmatprep.mubr.msk.f32.mxu0 %vm2969_vm1, %v2968_v17 }
 0x2bd   : > { %2646 = vmatprep.subr.mxu0 %v2968_v17 }
 0x2bf   : > { %2639 = vmatmul.mubr.msk.f32.vlgmr.msra.gmra.mxu0 %vm963_vm3, %v1126_v28 }
 0x2c0   : > { %2648 = vmatprep.mubr.msk.f32.mxu0 %vm2969_vm1, %v2968_v17  ;;  %2647 = vmatpush3.msra.mxu0 %v951_v57  ;;  %v1955_v57 = vld [vmem:[%s3204_s21 + $0x10] sm:$0xff] }
 0x2c1   : > { %2656 = vmatprep.subr.mxu0 %v2968_v17 }
 0x37b   : > { %v1034_v30 = vpop.f32.mrf.mxu0 }
 0x37c   : > { %v1035_v31 = vadd.f32 %v3287_v29, %v1034_v30 }
 0x37d   : > { %v2630_v32 = vpop.f32.mrf.mxu0 }
 0x37e   : > { %v1038_v33 = vsel %vm963_vm3, %v1035_v31, -inf }
 0x37f   : > { %1039 = vmax.xlane.f32.xlu1 %v1038_v33  ;;  %v1199_v34 = vpop.f32.mrf.mxu0 }
 0x380   : > { %v1200_v35 = vadd.f32 %v3287_v29, %v1199_v34 }
 0x381   : > { %v2640_v36 = vpop.f32.mrf.mxu0 }
 0x382   : > { %v1203_v37 = vsel %vm963_vm3, %v1200_v35, -inf }
 0x383   : > { %1204 = vmax.xlane.f32.xlu0 %v1203_v37 }
 0x408   : > { %v1040_v38 = vpop.xlane.xlu1 %1039 }
 0x409   : > { %v1041_v39 = vsub.f32 %v1035_v31, %v1040_v38 }
 0x40b   : > { %v1042_v40 = vmul.f32 1.442695, %v1041_v39 }
 0x40c   : > { %v1205_v41 = vpop.xlane.xlu0 %1204 }
 0x40d   : > { %2820 = vpow2.f32 %v1042_v40  ;;  %v1206_v42 = vsub.f32 %v1200_v35, %v1205_v41 }
 0x40f   : > { %v1207_v43 = vmul.f32 1.442695, %v1206_v42 }
 0x411   : > { %2822 = vpow2.f32 %v1207_v43 }
 0x41a   : > { %v2821_v44 = vpop.eup %2820 }
 0x41b   : > { %v1044_v45 = vsel %vm963_vm3, %v2821_v44, 0.0 }
 0x41c   : > { %1045 = vadd.xlane.f32.xlu0 %v1044_v45  ;;  %v2547_v45 = vld [vmem:[%s3592_s24] ss:$0 sm:$0xff] }
 0x41e   : > { %v2823_v46 = vpop.eup %2822 }
 0x41f   : > { %v1209_v47 = vsel %vm963_vm3, %v2823_v46, 0.0 }
 0x420   : > { %1210 = vadd.xlane.f32.xlu1 %v1209_v47 }
 0x431   : > { %1214 = vrot.lane.b32.xlu1 %v3266_v24, %s2973_s0  ;;  %s3603_s0 = sld [smem:[#allocation35_spill]] (!%p2556_p1) }
 0x432   : > { %1049 = vrot.lane.b32.xlu0 %v3266_v24, %s2974_s6 }
 0x435   : > { %1438 = vrot.lane.b32.xlu1 %v3266_v24, %s2975_s10  ;;  %s3597_s10 = scalar_lea.vmem %s3519_s11, %s3164_s26 }
 0x436   : > { %1436 = vrot.lane.b32.xlu0 %v3266_v24, %s2976_s15 }
 0x4a5   : > { %v1046_v48 = vpop.xlane.xlu0 %1045 }
 0x4a6   : > { %2824 = vrcp.f32 %v1046_v48 }
 0x4a9   : > { %v1211_v49 = vpop.xlane.xlu1 %1210  ;;  %v1050_v50 = vpop.permute.xlu0 %1049 }
 0x4aa   : > { %2826 = vrcp.f32 %v1211_v49  ;;  %2632 = vmatpush3.msra.mxu1 %v1050_v50 }
 0x4ab   : > { %2641 = vmatprep.subr.mxu1 %v2968_v17 }
 0x4ad   : > { %v1215_v53 = vpop.permute.xlu1 %1214  ;;  %v1437_v63 = vpop.permute.xlu0 %1436 }
 0x4b1   : > { %v1439_v61 = vpop.permute.xlu1 %1438 }
 0x4b3   : > { %v2825_v51 = vpop.eup %2824 }
 0x4b4   : > { %v1048_v52 = vmul.f32 %v2825_v51, %v2821_v44 }
 0x4b6   : > { %2634 = vmatmul.mubr.msk.f32.vlgmr.msra.gmra.mxu1 %vm963_vm3, %v1048_v52 }
 0x4b7   : > { %v2827_v54 = vpop.eup %2826  ;;  %2642 = vmatpush3.msra.mxu1 %v1215_v53  ;;  %2643 = vmatprep.mubr.msk.f32.mxu1 %vm2969_vm1, %v2968_v17 }
 0x4b8   : > { %v1213_v55 = vmul.f32 %v2827_v54, %v2823_v46  ;;  %2651 = vmatprep.subr.mxu1 %v2968_v17 }
 0x4ba   : > { %2644 = vmatmul.mubr.msk.f32.vlgmr.msra.gmra.mxu1 %vm963_vm3, %v1213_v55 }
 0x4bb   : > { %2653 = vmatprep.mubr.msk.f32.mxu1 %vm2969_vm1, %v2968_v17  ;;  %2652 = vmatpush3.msra.mxu1 %v950_v56  ;;  %v1956_v56 = vld [vmem:[%s3204_s21 + $0x18] sm:$0xff] }
 0x4bc   : > { %2661 = vmatprep.subr.mxu1 %v2968_v17 }
 0x576   : > { %v1121_v58 = vpop.f32.mrf.mxu1 }
 0x577   : > { %2654 = vmatmul.mubr.msk.f32.vlgmr.msra.gmra.mxu1 %vm963_vm3, %v1121_v58  ;;  %v1954_v58 = vld [vmem:[%s3204_s21 + $0x8] sm:$0xff] }
 0x578   : > { %v2635_v59 = vpop.f32.mrf.mxu1  ;;  %2663 = vmatprep.mubr.msk.f32.mxu1 %vm2969_vm1, %v2968_v17 }
 0x57a   : > { %v1286_v60 = vpop.f32.mrf.mxu1 }
 0x57b   : > { %2649 = vmatmul.mubr.msk.f32.vlgmr.msra.gmra.mxu0 %vm963_vm3, %v1286_v60 }
 0x57c   : > { %2657 = vmatpush3.xpose.msk.msra.mxu0 %vm963_vm3, %v1439_v61  ;;  %v2645_v62 = vpop.f32.mrf.mxu1  ;;  %2658 = vmatprep.mubr.msk.f32.mxu0 %vm2969_vm1, %v2968_v17 }
 0x57d   : > { %2666 = vmatprep.subr.mxu0 %v2968_v17 }
 0x57f   : > { %2659 = vmatmul.mubr.msk.f32.vlgmr.msra.gmra.mxu0 %vm963_vm3, %v1437_v63  ;;  %v2548_v63 = vld [vmem:[%s3594_s1] ss:$0 sm:$0xff] }
 0x580   : > { %2668 = vmatprep.mubr.msk.f32.mxu0 %vm2969_vm1, %v2968_v17  ;;  %2667 = vmatpush3.msra.mxu0 %v952_v22 }
 0x581   : > { %2676 = vmatprep.subr.mxu0 %v2968_v17 }
 0x637   : > { %v1432_v0 = vpop.f32.mrf.mxu1 }
 0x639   : > { %v2655_v1 = vpop.f32.mrf.mxu1 }
 0x63a   : > { %v2549_v1 = vld [vmem:[%s3596_s16] ss:$0 sm:$0xff] }
 0x63b   : > { %v1359_v2 = vpop.f32.mrf.mxu0 }
 0x63c   : > { %v3322_v3 = vadd.f32 %v1432_v0, %v1359_v2 }
 0x63d   : > { %v2650_v4 = vpop.f32.mrf.mxu0 }
 0x63e   : > { %v2053_v4 = vld [vmem:[%s3218_s8 + $0x38] sm:$0xff] }
 0x63f   : > { %v1510_v5 = vpop.f32.mrf.mxu0 }
 0x640   : > { %v1511_v6 = vadd.f32 %v3287_v29, %v1510_v5  ;;  %v2052_v5 = vld [vmem:[%s3218_s8 + $0x30] sm:$0xff] }
 0x641   : > { %v2660_v7 = vpop.f32.mrf.mxu0 }
 0x642   : > { %v1514_v8 = vsel %vm963_vm3, %v1511_v6, -inf  ;;  %v2050_v7 = vld [vmem:[%s3218_s8 + $0x20] sm:$0xff] }
 0x643   : > { %1515 = vmax.xlane.f32.xlu1 %v1514_v8  ;;  %v2049_v8 = vld [vmem:[%s3218_s8 + $0x18] sm:$0xff] }
 0x654   : > { %1677 = vrot.lane.b32.xlu1 %v3266_v24, %s2977_s19 }
 0x658   : > { %1675 = vrot.lane.b32.xlu1 %v3266_v24, %s2978_s20 }
 0x6cc   : > { %v1516_v9 = vpop.xlane.xlu1 %1515 }
 0x6cd   : > { %v1517_v10 = vsub.f32 %v1511_v6, %v1516_v9  ;;  %v2051_v6 = vld [vmem:[%s3218_s8 + $0x28] sm:$0xff]  ;;  %v2048_v9 = vld [vmem:[%s3218_s8 + $0x10] sm:$0xff] }
 0x6cf   : > { %v1518_v11 = vmul.f32 1.442695, %v1517_v10  ;;  %v2047_v10 = vld [vmem:[%s3218_s8 + $0x8] sm:$0xff] }
 0x6d0   : > { %v1678_v18 = vpop.permute.xlu1 %1677 }
 0x6d1   : > { %2828 = vpow2.f32 %v1518_v11  ;;  %v2046_v11 = vld [vmem:[%s3218_s8] sm:$0xff] }
 0x6d4   : > { %v1676_v20 = vpop.permute.xlu1 %1675 }
 0x6de   : > { %v2829_v12 = vpop.eup %2828 }
 0x6df   : > { %v1520_v13 = vsel %vm963_vm3, %v2829_v12, 0.0 }
 0x6e0   : > { %1521 = vadd.xlane.f32.xlu0 %v1520_v13 }
 0x6f6   : > { %1525 = vrot.lane.b32.xlu0 %v3266_v24, %s2979_s22 }
 0x769   : > { %v1522_v14 = vpop.xlane.xlu0 %1521 }
 0x76a   : > { %2830 = vrcp.f32 %v1522_v14 }
 0x76d   : > { %v1526_v15 = vpop.permute.xlu0 %1525 }
 0x76e   : > { %2662 = vmatpush3.msra.mxu1 %v1526_v15 }
 0x76f   : > { %2671 = vmatprep.subr.mxu1 %v2968_v17 }
 0x777   : > { %v2831_v16 = vpop.eup %2830 }
 0x778   : > { %v1524_v19 = vmul.f32 %v2831_v16, %v2829_v12  ;;  %v2550_v12 = vld [vmem:[%s3597_s10] ss:$0 sm:$0xff] }
 0x77a   : > { %2664 = vmatmul.mubr.msk.f32.vlgmr.msra.gmra.mxu1 %vm963_vm3, %v1524_v19 }
 0x77b   : > { %2672 = vmatpush3.xpose.msk.msra.mxu1 %vm963_vm3, %v1678_v18  ;;  %2673 = vmatprep.mubr.msk.f32.mxu1 %vm2969_vm1, %v2968_v17 }
 0x77c   : > { %2681 = vmatprep.subr.mxu1 %v2968_v17 }
 0x77e   : > { %2674 = vmatmul.mubr.msk.f32.vlgmr.msra.gmra.mxu1 %vm963_vm3, %v1676_v20 }
 0x77f   : > { %2683 = vmatprep.mubr.msk.f32.mxu1 %vm2969_vm1, %v2968_v17 }
 0x83a   : > { %v1597_v23 = vpop.f32.mrf.mxu1 }
 0x83b   : > { %2669 = vmatmul.mubr.msk.f32.vlgmr.msra.gmra.mxu0 %vm963_vm3, %v1597_v23 }
 0x83c   : > { %v2665_v25 = vpop.f32.mrf.mxu1  ;;  %2678 = vmatprep.mubr.msk.f32.mxu0 %vm2969_vm1, %v2968_v17 }
 0x83e   : > { %v1749_v26 = vpop.f32.mrf.mxu1 }
 0x83f   : > { %v1750_v27 = vadd.f32 %v3287_v29, %v1749_v26  ;;  %v953_v29 = vld [vmem:[%s3187_s2 + $0x18] sm:$0xff] }
 0x840   : > { %v2675_v28 = vpop.f32.mrf.mxu1  ;;  %2682 = vmatpush3.msra.mxu1 %v953_v29 }
 0x841   : > { %v1753_v30 = vsel %vm963_vm3, %v1750_v27, -inf  ;;  %2697 = vmatprep.subr.mxu1 %v2968_v17 }
 0x842   : > { %1754 = vmax.xlane.f32.xlu0 %v1753_v30 }
 0x858   : > { %1764 = vrot.lane.b32.xlu0 %v3266_v24, %s2980_s29 }
 0x8cb   : > { %v1755_v31 = vpop.xlane.xlu0 %1754 }
 0x8cc   : > { %v1756_v32 = vsub.f32 %v1750_v27, %v1755_v31  ;;  %v2552_v27 = vld [vmem:[%s819_s30] ss:$0 sm:$0xff] }
 0x8ce   : > { %v1757_v33 = vmul.f32 1.442695, %v1756_v32 }
 0x8cf   : > { %v1765_v34 = vpop.permute.xlu0 %1764 }
 0x8d0   : > { %2832 = vpow2.f32 %v1757_v33  ;;  %2677 = vmatpush3.msra.mxu0 %v1765_v34 }
 0x8d1   : > { %2686 = vmatprep.subr.mxu0 %v2968_v17 }
 0x8dd   : > { %v2833_v35 = vpop.eup %2832 }
 0x8de   : > { %v1759_v36 = vsel %vm963_vm3, %v2833_v35, 0.0 }
 0x8df   : > { %1760 = vadd.xlane.f32.xlu1 %v1759_v36 }
 0x8fb   : > { %v1670_v37 = vpop.f32.mrf.mxu0 }
 0x8fc   : > { %v1674_v24 = vadd.f32 %v1670_v37, %v3322_v3 }
 0x8fd   : > { %v2670_v38 = vpop.f32.mrf.mxu0 }
 0x968   : > { %v1761_v39 = vpop.xlane.xlu1 %1760 }
 0x969   : > { %2834 = vrcp.f32 %v1761_v39 }
 0x976   : > { %v2835_v40 = vpop.eup %2834 }
 0x977   : > { %v1763_v41 = vmul.f32 %v2835_v40, %v2833_v35 }
 0x979   : > { %2679 = vmatmul.mubr.msk.f32.vlgmr.msra.gmra.mxu0 %vm963_vm3, %v1763_v41  ;;  %v2554_v41 = vld [vmem:[%s822_s4] ss:$0 sm:$0xff] }
 0x97a   : > { %2694 = vmatprep.mubr.msk.f32.mxu0 %vm2969_vm1, %v2968_v17  ;;  %2687 = vmatpush3.msra.mxu0 %v1956_v56 }
 0x97b   : > { %2688 = vmatprep.subr.mxu0 %v2968_v17 }
 0x97c   : > { %2689 = vmatpush3.msra.mxu0 %v1955_v57 }
 0x97d   : > { %2690 = vmatprep.subr.mxu0 %v2968_v17 }
 0x97e   : > { %2691 = vmatpush3.msra.mxu0 %v1954_v58 }
 0x97f   : > { %2692 = vmatprep.subr.mxu0 %v2968_v17 }
 0xa39   : > { %v1836_v42 = vpop.f32.mrf.mxu0 }
 0xa3a   : > { %2684 = vmatmul.mubr.msk.f32.vlgmr.msra.gmra.mxu1 %vm963_vm3, %v1836_v42 }
 0xa3b   : > { %v2680_v43 = vpop.f32.mrf.mxu0  ;;  %2713 = vmatprep.mubr.msk.f32.mxu1 %vm2969_vm1, %v2968_v17  ;;  %2698 = vmatpush3.msra.mxu1 %v2053_v4 }
 0xa3c   : > { %2699 = vmatprep.subr.mxu1 %v2968_v17  ;;  %v2555_v43 = vld [vmem:[%s825_s9] ss:$0 sm:$0xff] }
 0xa3d   : > { %2700 = vmatpush3.msra.mxu1 %v2052_v5 }
 0xa3e   : > { %2701 = vmatprep.subr.mxu1 %v2968_v17 }
 0xa3f   : > { %2702 = vmatpush3.msra.mxu1 %v2051_v6 }
 0xa40   : > { %2703 = vmatprep.subr.mxu1 %v2968_v17 }
 0xa41   : > { %2704 = vmatpush3.msra.mxu1 %v2050_v7 }
 0xa42   : > { %2705 = vmatprep.subr.mxu1 %v2968_v17 }
 0xa43   : > { %2706 = vmatpush3.msra.mxu1 %v2049_v8 }
 0xa44   : > { %2707 = vmatprep.subr.mxu1 %v2968_v17 }
 0xa45   : > { %2708 = vmatpush3.msra.mxu1 %v2048_v9 }
 0xa46   : > { %2709 = vmatprep.subr.mxu1 %v2968_v17 }
 0xa47   : > { %2710 = vmatpush3.msra.mxu1 %v2047_v10 }
 0xa48   : > { %2711 = vmatprep.subr.mxu1 %v2968_v17 }
 0xa49   : > { %2712 = vmatpush3.msra.mxu1 %v2046_v11 }
 0xafa   : > { %v1909_v44 = vpop.f32.mrf.mxu1 }
 0xafb   : > { %v1913_v46 = vadd.f32 %v1909_v44, %v1674_v24 }
 0xafc   : > { %v2685_v47 = vpop.f32.mrf.mxu1 }
 0xafd   : > { %v1921_v48 = vadd.f32 %v2547_v45, %v1913_v46 }
 0xaff   : > { %v1922_v49 = vadd.f32 %v1921_v48, %v3253_v21  ;;  %v1953_v21 = vld [vmem:[%s3204_s21] sm:$0xff] }
 0xb00   : > { %2693 = vmatpush3.msra.mxu0 %v1953_v21 }
 0xb01   : > { %v1925_v50 = vsel %vm876_vm2, %v1922_v49, 0.0 }
 0xb02   : > { %1926 = vadd.xlane.f32.xlu1 %v1925_v50 }
 0xb8b   : > { %v1927_v51 = vpop.xlane.xlu1 %1926 }
 0xb8c   : > { %v1929_v52 = vmul.f32 0.03125, %v1927_v51 }
 0xb8e   : > { %v1930_v53 = vsub.f32 %v1922_v49, %v1929_v52 }
 0xb90   : > { %v1931_v54 = vmul.f32 %v1930_v53, %v1930_v53 }
 0xb92   : > { %v1932_v55 = vsel %vm876_vm2, %v1931_v54, 0.0 }
 0xb93   : > { %1933 = vadd.xlane.f32.xlu1 %v1932_v55 }
 0xc1c   : > { %v1934_v59 = vpop.xlane.xlu1 %1933 }
 0xc1d   : > { %v1935_v60 = vmul.f32 0.03125, %v1934_v59 }
 0xc1f   : > { %v1936_v61 = vadd.f32 1e-12, %v1935_v60 }
 0xc21   : > { %2836 = vrsqrt.f32 %v1936_v61 }
 0xc2e   : > { %v2837_v62 = vpop.eup %2836 }
 0xc2f   : > { %v1938_v0 = vmul.f32 %v2837_v62, %v1930_v53 }
 0xc31   : > { %v1945_v2 = vmul.f32 %v2548_v63, %v1938_v0 }
 0xc33   : > { %v1952_v3 = vadd.f32 %v2549_v1, %v1945_v2 }
 0xc35   : > { %2695 = vmatmul.mubr.msk.f32.vlgmr.msra.gmra.mxu0 %vm876_vm2, %v1952_v3 }
 0xcf5   : > { %v2033_v13 = vpop.f32.mrf.mxu0 }
 0xcf6   : > { %v2034_v14 = vadd.f32 %v2550_v12, %v2033_v13 }
 0xcf7   : > { %v2696_v15 = vpop.f32.mrf.mxu0 }
 0xcf8   : > { %v2038_v16 = vmul.f32 0.044715, %v2034_v14  ;;  %v2037_v25 = vmul.f32 0.5, %v2034_v14 }
 0xcfa   : > { %v2039_v18 = vmul.f32 %v2038_v16, %v2034_v14 }
 0xcfc   : > { %v2040_v19 = vmul.f32 %v2039_v18, %v2034_v14 }
 0xcfe   : > { %v2041_v20 = vadd.f32 %v2040_v19, %v2034_v14 }
 0xd00   : > { %v2042_v22 = vmul.f32 0.7978846, %v2041_v20 }
 0xd02   : > { %2838 = vtanh.f32 %v2042_v22 }
 0xd0f   : > { %v2839_v23 = vpop.eup %2838 }
 0xd10   : > { %v2044_v26 = vadd.f32 1.0, %v2839_v23 }
 0xd12   : > { %v2045_v17 = vmul.f32 %v2044_v26, %v2037_v25 }
 0xd14   : > { %2714 = vmatmul.mubr.msk.f32.vlgmr.msra.gmra.mxu1 %vm2061_vm4, %v2045_v17 }
 0xdd4   : > { %v2131_v28 = vpop.f32.mrf.mxu1 }
 0xdd5   : > { %v2132_v30 = vadd.f32 %v2552_v27, %v2131_v28 }
 0xdd6   : > { %v2715_v31 = vpop.f32.mrf.mxu1 }
 0xdd7   : > { %v2135_v32 = vadd.f32 %v2132_v30, %v1952_v3 }
 0xdd9   : > { %v2138_v33 = vsel %vm876_vm2, %v2135_v32, 0.0 }
 0xdda   : > { %2139 = vadd.xlane.f32.xlu1 %v2138_v33 }
 0xe63   : > { %v2140_v34 = vpop.xlane.xlu1 %2139 }
 0xe64   : > { %v2141_v35 = vmul.f32 0.03125, %v2140_v34 }
 0xe66   : > { %v2142_v36 = vsub.f32 %v2135_v32, %v2141_v35 }
 0xe68   : > { %v2143_v29 = vmul.f32 %v2142_v36, %v2142_v36 }
 0xe6a   : > { %v2144_v37 = vsel %vm876_vm2, %v2143_v29, 0.0 }
 0xe6b   : > { %2145 = vadd.xlane.f32.xlu1 %v2144_v37 }
 0xef4   : > { %v2146_v24 = vpop.xlane.xlu1 %2145 }
 0xef5   : > { %v2147_v38 = vmul.f32 0.03125, %v2146_v24 }
 0xef7   : > { %v2148_v39 = vadd.f32 1e-12, %v2147_v38 }
 0xef9   : > { %2840 = vrsqrt.f32 %v2148_v39 }
 0xf06   : > { %v2841_v40 = vpop.eup %2840 }
 0xf07   : > { %v2150_v42 = vmul.f32 %v2841_v40, %v2142_v36 }
 0xf09   : > { %v2157_v44 = vmul.f32 %v2554_v41, %v2150_v42  ;;  %2169 = sbr.rel (%p2556_p1) target bundleno = 4073 (0xfe9), region = 100 }
 0xf0b   : > { %v2164_v45 = vadd.f32 %v2555_v43, %v2157_v44 }
 0xf0d   : > { %2165 = vst.msk [vmem:[#allocation2] sm:$0xff] %vm876_vm2, %v2164_v45 }
 0xf0e   : > { %2170 = vst.msk [vmem:[%s3228_s12] sm:$0xff] %vm876_vm2, %v2164_v45  ;;  %v2174_v46 = vld [vmem:[%s3601_s23 + $0x18] sm:$0xff]  ;;  %v2981_v47 = vmov 0.0   ;;  %v2173_v48 = vld [vmem:[%s3602_s28 + $0x10] sm:$0xff]  ;;  %vm2982_vm5 = vmmov 0   ;;  %v2172_v49 = vld [vmem:[%s3602_s28 + $0x8] sm:$0xff] }
 0xf0f   : > { %2716 = vmatprep.subr.mxu0 %v2981_v47  ;;  %2724 = vmatprep.mubr.msk.f32.mxu0 %vm2982_vm5, %v2981_v47  ;;  %v2171_v50 = vld [vmem:[%s3602_s28] sm:$0xff]  ;;  %vm2250_vm6 = vcmask 253952  }
 0xf10   : > { %2717 = vmatpush3.msra.mxu0 %v2174_v46  ;;  %v2175_v51 = vld [vmem:[%s3603_s0] sm:$0x1] }
 0xf11   : > { %2718 = vmatprep.subr.mxu0 %v2981_v47 }
 0xf12   : > { %2719 = vmatpush3.msra.mxu0 %v2173_v48 }
 0xf13   : > { %2720 = vmatprep.subr.mxu0 %v2981_v47 }
 0xf14   : > { %2721 = vmatpush3.msra.mxu0 %v2172_v49 }
 0xf15   : > { %2722 = vmatprep.subr.mxu0 %v2981_v47 }
 0xf16   : > { %2723 = vmatpush3.msra.mxu0 %v2171_v50 }
 0xf17   : > { %2725 = vmatmul.mubr.msk.f32.vlgmr.msra.gmra.mxu0 %vm876_vm2, %v2164_v45 }
 0xfd7   : > { %v2245_v52 = vpop.f32.mrf.mxu0 }
 0xfd8   : > { %v2246_v53 = vadd.f32 %v2245_v52, %v2175_v51 }
 0xfd9   : > { %v2726_v54 = vpop.f32.mrf.mxu0 }
 0xfda   : > { %2842 = vtanh.f32 %v2246_v53 }
 0xfe7   : > { %v2843_v55 = vpop.eup %2842 }
 0xfe8   : > { %2251 = vst.msk [vmem:[%s774_s14] sm:$0x1] %vm2250_vm6, %v2843_v55 }
 0xfe9 PF: > { %s3604_s6 = sld [smem:[#allocation13_spill]]  ;;  %s2270_s22 = sshll.u32 %s3228_s12, 4  ;;  %s2271_s22 = int_to_ptr.vmem [resolvable:$true] %s2270_s22 }
 0xfea   : > { %s3606_s19 = sld [smem:[#allocation36_spill]]  ;;  %s2253_s29 = scalar_lea.sflag [#allocation4], %s3155_s25 }
 0xfeb   : > { %s2844_s2 = scalar_lea.vmem %s2271_s22, 128  ;;  %s2983_s3 = smov [#allocation3]  }
 0xfec   : > { %p2845_p2 = scmp.ne.s32.totalorder %s2271_s22, %s2844_s2  ;;  %s2848_s24 = sshll.u32 %s2983_s3, 4  ;;  %s2849_s24 = int_to_ptr.vmem [resolvable:$false] %s2848_s24 }
 0xfed   : > { %s2850_s17 = scalar_lea.vmem %s2849_s24, 256  ;;  %p2851_p6 = scmp.lt.s32.totalorder %s2271_s22, %s2849_s24 }
 0xfee   : > { %p2846_p4 = pnand %p2845_p2, %p3134_p3  ;;  %p2852_p7 = scmp.lt.s32.totalorder %s2850_s17, %s2844_s2 }
 0xfef   : > { %s2559_s8 = sshll.u32 %s3604_s6, 7 }
 0xff0   : > { %s2268_s20 = scalar_lea.hbm %s3606_s19, %s2559_s8  ;;  %p2847_p5 = pneg %p2846_p4 }
 0xff1   : > { %p2853_p8 = por %p2852_p7, %p2851_p6 }
 0xff3   : > { %p2854_p10 = pnand %p2853_p8, %p2847_p5 }
 0xff5   : > { %2857 = shalt.err (!%p2854_p10)
}
 0xff6   : > { %s2858_s23 = scalar_lea.hbm %s2268_s20, 128  ;;  %s2862_s1 = scalar_lea.hbm %s3606_s19, 256 }
 0xff7   : > { %p2859_p11 = scmp.ne.s32.totalorder %s2268_s20, %s2858_s23  ;;  %p2863_p0 = scmp.lt.s32.totalorder %s2268_s20, %s3606_s19 }
 0xff8   : > { %p2864_p1 = scmp.lt.s32.totalorder %s2862_s1, %s2858_s23 }
 0xff9   : > { %p2860_p12 = pnand %p2859_p11, %p3134_p3 }
 0xffa   : > { %p2865_p2 = por %p2864_p1, %p2863_p0 }
 0xffb   : > { %p2861_p13 = pneg %p2860_p12 }
 0xffd   : > { %p2866_p4 = pnand %p2865_p2, %p2861_p13 }
 0xfff   : > { %2869 = shalt.err (!%p2866_p4)
}
0x1000   : > { %2727 = dma.vmem_to_hbm [thread:$0]  (%p3134_p3), %s2271_s22, 128, %s2268_s20, %s2253_s29  }
0x1001   : > { %s2560_s21 = sshll.u32 %s3604_s6, 4  ;;  %s2283_s27 = sshll.u32 %s774_s14, 4  ;;  %s2284_s27 = int_to_ptr.vmem [resolvable:$true] %s2283_s27 }
0x1002   : > { %s3607_s0 = sld [smem:[#allocation37_spill]]  ;;  %s2258_s30 = scalar_lea.sflag [#allocation6], %s3155_s25 }
0x1003   : > { %s2870_s2 = scalar_lea.vmem %s2284_s27, 16  ;;  %s2984_s3 = smov [#allocation5]  }
0x1004   : > { %p2871_p5 = scmp.ne.s32.totalorder %s2284_s27, %s2870_s2  ;;  %s2874_s24 = sshll.u32 %s2984_s3, 4  ;;  %s2875_s24 = int_to_ptr.vmem [resolvable:$false] %s2874_s24 }
0x1005   : > { %s2876_s17 = scalar_lea.vmem %s2875_s24, 32  ;;  %p2877_p8 = scmp.lt.s32.totalorder %s2284_s27, %s2875_s24 }
0x1006   : > { %p2872_p6 = pnand %p2871_p5, %p3134_p3  ;;  %p2878_p10 = scmp.lt.s32.totalorder %s2876_s17, %s2870_s2 }
0x1008   : > { %s3608_s8 = smov %s3607_s0  ;;  %s2281_s15 = scalar_lea.hbm %s3607_s0, %s2560_s21 }
0x1009   : > { %p2873_p7 = pneg %p2872_p6  ;;  %p2879_p11 = por %p2878_p10, %p2877_p8 }
0x100b   : > { %p2880_p12 = pnand %p2879_p11, %p2873_p7 }
0x100d   : > { %2883 = shalt.err (!%p2880_p12)
}
0x100e   : > { %s2884_s14 = scalar_lea.hbm %s2281_s15, 16  ;;  %s2888_s20 = scalar_lea.hbm %s3608_s8, 32 }
0x100f   : > { %p2885_p13 = scmp.ne.s32.totalorder %s2281_s15, %s2884_s14  ;;  %p2889_p2 = scmp.lt.s32.totalorder %s2281_s15, %s3608_s8 }
0x1010   : > { %p2890_p4 = scmp.lt.s32.totalorder %s2888_s20, %s2884_s14 }
0x1011   : > { %p2886_p0 = pnand %p2885_p13, %p3134_p3 }
0x1012   : > { %p2891_p5 = por %p2890_p4, %p2889_p2 }
0x1013   : > { %p2887_p1 = pneg %p2886_p0 }
0x1015   : > { %p2892_p6 = pnand %p2891_p5, %p2887_p1 }
0x1017   : > { %2895 = shalt.err (!%p2892_p6)
}
0x1018   : > { %2728 = dma.vmem_to_hbm [thread:$0]  (%p3134_p3), %s2284_s27, 16, %s2281_s15, %s2258_s30  }
0x1019 PF: > { %s3609_s23 = sld [smem:[#allocation16_spill]] }
0x101a   : > { %s3610_s12 = sld [smem:[#allocation9_spill]] }
0x101f   : > { %p2738_p7 = scmp.ge.s32.totalorder %s3609_s23, 2 }
0x1020   : > { %s2295_s1 = sand.u32 1, %s3610_s12  }
0x1021   : > { %p2732_p8 = pnand %p2738_p7, %p3144_p9  ;;  %s2296_s9 = scalar_lea.sflag [#allocation4], %s2295_s1 }
0x1023   : > { %p2733_p10 = pneg %p2732_p8 }
0x1025   : > { %2929 = dma.done.wait (%p2733_p10), %s2296_s9, 128  }
0x1026   : > { %2931 = vsyncadd (%p2733_p10), %s2296_s9, 4294967168  ;;  %s2305_s26 = scalar_lea.sflag [#allocation6], %s2295_s1 }
0x1027   : > { %2933 = dma.done.wait (%p2733_p10), %s2305_s26, 16  }
0x1028   : > { %2935 = vsyncadd (%p2733_p10), %s2305_s26, 4294967280  ;;  %s36_s23 = sadd.s32 1, %s3609_s23   ;;  %s3612_s0 = sld [smem:[#allocation10_spill]] }
0x1029   : > { %p33_p11 = scmp.ge.s32.totalorder %s36_s23, 6   ;;  %s3613_s30 = sld [smem:[#allocation11_spill]] }
0x102a   : > { %s3614_s20 = sld [smem:[#allocation21_spill]] }
0x102b   : > { %s3615_s21 = sld [smem:[#allocation14_spill]]  ;;  %35 = sbr.rel (!%p33_p11) target bundleno = 24 (0x18), region = 191 }
0x102c   : > { %s3616_s1 = sld [smem:[#allocation15_spill]] }
0x102d   : > { %s3617_s22 = sld [smem:[#allocation17_spill]] }
0x102e   : > { %s3618_s2 = sld [smem:[#allocation19_spill]] }
0x1030   :  { %2309 = vsyncpa [#allocation4], 1 }
0x1031   :  { %2311 = vsyncpa [#allocation4 + $0x1], 1 }
0x1032   :  { %2312 = vsyncpa [#allocation6], 1 }
0x1033   :  { %2314 = vsyncpa [#allocation6 + $0x1], 1 }

</bundles_post_ra>
